<compile_context>
chip_gen: v7x
topology: tpu7x:2x2x1
jax: 0.10.0
libtpu: 0.0.40
codegen_flags: <defaults>
</compile_context>

<pallas_src>
import functools

import jax
import jax.numpy as jnp
from jax.experimental import pallas as pl
from jax.experimental.pallas import tpu as pltpu


def _tncl_kernel(x_ref, xt_ref, fidx_ref, o_ref,
                 m_sc, l_sc, num_sc,
                 *, temperature, n, tq, tc):
    i = pl.program_id(0)          # row-tile index ("parallel")
    c = pl.program_id(1)          # column-tile index ("arbitrary" reduction, last)
    n_col = pl.num_programs(1)

    # ---- per-row-tile carry init at the first column tile --------------------
    @pl.when(c == 0)
    def _():
        m_sc[...] = jnp.full_like(m_sc, -1e30)   # running row max
        l_sc[...] = jnp.zeros_like(l_sc)         # running sum of exp(s - m)
        num_sc[...] = jnp.zeros_like(num_sc)     # s at the first-positive column

    # ---- similarity tile on the MXU -------------------------------------------
    inv_t = jnp.float32(1.0 / temperature)
    x = x_ref[...] * inv_t                                           # (TQ, D)
    s = jnp.dot(x, xt_ref[...], preferred_element_type=jnp.float32)  # (TQ, TC)

    # tile-sized global row / column indices (no N x N iota matrices)
    row_ids = i * tq + jax.lax.broadcasted_iota(jnp.int32, (tq, 1), 0)
    col_ids = c * tc + jax.lax.broadcasted_iota(jnp.int32, (1, tc), 1)

    # ---- numerator: logit at the precomputed first-positive column ------------
    fidx = fidx_ref[...]                          # (TQ, 1) int32; == n if no positive
    num_sc[...] += jnp.sum(jnp.where(col_ids == fidx, s, 0.0),
                           axis=1, keepdims=True)

    # ---- mask diagonal + padded columns, online logsumexp over column tiles ----
    mask = (row_ids == col_ids) | (col_ids >= n)
    s = jnp.where(mask, jnp.float32(-1e30), s)
    m_prev = m_sc[...]
    m_new = jnp.maximum(m_prev, jnp.max(s, axis=1, keepdims=True))
    alpha = jnp.exp(m_prev - m_new)
    l_sc[...] = alpha * l_sc[...] + jnp.sum(jnp.exp(s - m_new),
                                            axis=1, keepdims=True)
    m_sc[...] = m_new

    # ---- finalize this row tile at the last column tile ------------------------
    @pl.when(c == n_col - 1)
    def _():
        has_pos = fidx < n
        row_loss = m_sc[...] + jnp.log(l_sc[...]) - num_sc[...]
        # rows without any positive pair reproduce the reference's -log(0) = +inf
        o_ref[...] = jnp.where(has_pos, row_loss, jnp.float32(jnp.inf))


def temperature_normalized_contrastive_loss(output, target, temperature=0.1):
    """output: [N, D] float, target: [N] integer labels -> scalar float32 loss."""
    output = output.astype(jnp.float32)
    target = target.astype(jnp.int32)
    n, d = output.shape

    # --- labels-only precompute (plain JAX, once per call) ----------------------
    eye = jnp.eye(n, dtype=bool)
    eq = (target[:, None] == target[None, :]) & (~eye)
    col = jnp.arange(n, dtype=jnp.int32)[None, :]
    first_idx = jnp.min(jnp.where(eq, col, n), axis=1).astype(jnp.int32)

    # --- pad N up to a multiple of 128 so every tile is (8,128)-aligned ----------
    n_pad = ((n + 127) // 128) * 128
    pad = n_pad - n
    if pad:
        output = jnp.pad(output, ((0, pad), (0, 0)))
        first_idx = jnp.pad(first_idx, (0, pad), constant_values=n)
    first_idx = first_idx.reshape(n_pad, 1)        # (Npad, 1); == n when no positive

    # One-time transpose so the kernel's RHS is a clean [K, TC] MXU operand.
    xt = output.T                                   # (D, Npad)

    # Row tiles: 128 (sublane aligned).  Column tiles: 256 when possible (fewer
    # grid steps / row-tile reloads) while keeping the (TQ,TC) f32 tile <= 32 vregs.
    tq = 128
    tc = 256 if n_pad % 256 == 0 else 128
    grid = (n_pad // tq, n_pad // tc)

    kernel = functools.partial(_tncl_kernel, temperature=float(temperature),
                               n=n, tq=tq, tc=tc)

    per_row = pl.pallas_call(
        kernel,
        out_shape=jax.ShapeDtypeStruct((n_pad, 1), jnp.float32),
        grid_spec=pltpu.PrefetchScalarGridSpec(
            num_scalar_prefetch=0,
            grid=grid,
            in_specs=[
                pl.BlockSpec((tq, d), lambda i, c: (i, 0)),   # row tile of x
                pl.BlockSpec((d, tc), lambda i, c: (0, c)),   # column tile of x.T
                pl.BlockSpec((tq, 1), lambda i, c: (i, 0)),   # first-positive index
            ],
            out_specs=pl.BlockSpec((tq, 1), lambda i, c: (i, 0)),
            scratch_shapes=[
                pltpu.VMEM((tq, 1), jnp.float32),   # running max m
                pltpu.VMEM((tq, 1), jnp.float32),   # running sum l
                pltpu.VMEM((tq, 1), jnp.float32),   # numerator s[i, j*]
            ],
        ),
        compiler_params=pltpu.CompilerParams(
            dimension_semantics=("parallel", "arbitrary")),
    )(output, xt, first_idx)

    # Tiny final reduction in plain JAX (drops padded rows, keeps tiles independent).
    return jnp.sum(per_row[:n, 0]) / n


def _reference(output, target, temperature=0.1):
    # Pure-JAX reference mirroring the PyTorch forward.
    n = output.shape[0]
    sim = jnp.exp(output @ output.T / temperature)
    sim = sim - jnp.eye(n) * sim
    sim = sim / jnp.maximum(jnp.sum(jnp.abs(sim), axis=1, keepdims=True), 1e-12)
    lbl = (target[:, None] == target[None, :]).astype(jnp.float32) - jnp.eye(n)
    max_per_row = jnp.max(lbl, axis=1, keepdims=True)
    idx = jnp.argmax(lbl, axis=1)
    temp = jnp.zeros_like(lbl)
    temp = temp.at[jnp.arange(n), idx].set(max_per_row[:, 0])
    loss = -jnp.sum(jnp.log(jnp.sum(sim * temp, axis=1)))
    return loss / n


if __name__ == "__main__":
    key = jax.random.PRNGKey(0)
    N, D = 256, 32   # exercises a (2, 1) grid of 128x256 tiles
    emb = jax.random.normal(key, (N, D), dtype=jnp.float32)
    emb = emb / jnp.linalg.norm(emb, axis=1, keepdims=True)
    # 32 classes x 8 samples -> every row has at least one positive pair
    target = jnp.tile(jnp.arange(32, dtype=jnp.int32), 8)

    loss = temperature_normalized_contrastive_loss(emb, target, temperature=0.1)
    loss = jax.block_until_ready(loss)

    ref = _reference(emb, target, temperature=0.1)
    assert jnp.allclose(loss, ref, rtol=1e-4, atol=1e-4), (loss, ref)

    # also exercise the non-128-aligned (padded) path
    N2 = 200
    emb2 = jax.random.normal(jax.random.PRNGKey(1), (N2, D), dtype=jnp.float32)
    emb2 = emb2 / jnp.linalg.norm(emb2, axis=1, keepdims=True)
    target2 = jnp.concatenate([jnp.arange(100, dtype=jnp.int32)] * 2)
    loss2 = jax.block_until_ready(
        temperature_normalized_contrastive_loss(emb2, target2, temperature=0.1))
    ref2 = _reference(emb2, target2, temperature=0.1)
    assert jnp.allclose(loss2, ref2, rtol=1e-4, atol=1e-4), (loss2, ref2)

    print("KERNEL_OK")
</pallas_src>

<mosaic_0001>
module attributes {stable_mosaic.version = 11 : i64} {
  func.func @_tncl_kernel(%arg0: i32, %arg1: i32, %arg2: memref<128x32xf32, #tpu.memory_space<vmem>>, %arg3: memref<32x256xf32, #tpu.memory_space<vmem>>, %arg4: memref<128x1xi32, #tpu.memory_space<vmem>>, %arg5: memref<128x1xf32, #tpu.memory_space<vmem>>, %arg6: memref<128x1xf32, #tpu.memory_space<vmem>>, %arg7: memref<128x1xf32, #tpu.memory_space<vmem>>, %arg8: memref<128x1xf32, #tpu.memory_space<vmem>>) attributes {dimension_semantics = [#tpu.dimension_semantics<parallel>, #tpu.dimension_semantics<arbitrary>], iteration_bounds = array<i64: 2, 1>, scalar_prefetch = 0 : i64, scratch_operands = 3 : i64, tpu.core_type = #tpu.core_type<tc>, window_params = [{transform_indices = @transform_0, window_bounds = array<i64: 128, 32>}, {transform_indices = @transform_1, window_bounds = array<i64: 32, 256>}, {transform_indices = @transform_2, window_bounds = array<i64: 128, 1>}, {transform_indices = @transform_3, window_bounds = array<i64: 128, 1>}]} {
    %c0_i32 = arith.constant 0 : i32
    %0 = arith.cmpi eq, %arg1, %c0_i32 : i32
    %1 = arith.extui %0 : i1 to i32
    %c0_i32_0 = arith.constant 0 : i32
    %2 = arith.cmpi ne, %1, %c0_i32_0 : i32
    scf.if %2 {
      %cst_27 = arith.constant -1.000000e+30 : f32
      %55 = vector.broadcast %cst_27 : f32 to vector<128x1xf32>
      %c0_28 = arith.constant 0 : index
      %c0_29 = arith.constant 0 : index
      %56 = vector.load %arg6[%c0_28, %c0_29] : memref<128x1xf32, #tpu.memory_space<vmem>>, vector<128x1xf32>
      tpu.vector_store %arg6[%c0_28, %c0_29], %55 {strides = array<i32>} : memref<128x1xf32, #tpu.memory_space<vmem>>, vector<128x1xf32>,
      %cst_30 = arith.constant 0.000000e+00 : f32
      %57 = vector.broadcast %cst_30 : f32 to vector<128x1xf32>
      %c0_31 = arith.constant 0 : index
      %c0_32 = arith.constant 0 : index
      %58 = vector.load %arg7[%c0_31, %c0_32] : memref<128x1xf32, #tpu.memory_space<vmem>>, vector<128x1xf32>
      tpu.vector_store %arg7[%c0_31, %c0_32], %57 {strides = array<i32>} : memref<128x1xf32, #tpu.memory_space<vmem>>, vector<128x1xf32>,
      %cst_33 = arith.constant 0.000000e+00 : f32
      %59 = vector.broadcast %cst_33 : f32 to vector<128x1xf32>
      %c0_34 = arith.constant 0 : index
      %c0_35 = arith.constant 0 : index
      %60 = vector.load %arg8[%c0_34, %c0_35] : memref<128x1xf32, #tpu.memory_space<vmem>>, vector<128x1xf32>
      tpu.vector_store %arg8[%c0_34, %c0_35], %59 {strides = array<i32>} : memref<128x1xf32, #tpu.memory_space<vmem>>, vector<128x1xf32>,
    } else {
    }
    %c0 = arith.constant 0 : index
    %c0_1 = arith.constant 0 : index
    %3 = vector.load %arg2[%c0, %c0_1] : memref<128x32xf32, #tpu.memory_space<vmem>>, vector<128x32xf32>
    %cst = arith.constant 1.000000e+01 : f32
    %4 = vector.broadcast %cst : f32 to vector<128x32xf32>
    %5 = arith.mulf %3, %4 : vector<128x32xf32>
    %c0_2 = arith.constant 0 : index
    %c0_3 = arith.constant 0 : index
    %6 = vector.load %arg3[%c0_2, %c0_3] : memref<32x256xf32, #tpu.memory_space<vmem>>, vector<32x256xf32>
    %cst_4 = arith.constant dense<0.000000e+00> : vector<128x256xf32>
    %7 = tpu.matmul %5, %6, %cst_4 {dimension_numbers = #tpu.dot_dimension_numbers<[1], [0], [0], [1], [0, 0, 1, 1], [], []>} : vector<128x32xf32>, vector<32x256xf32>, vector<128x256xf32> -> vector<128x256xf32>
    %c128_i32 = arith.constant 128 : i32
    %8 = arith.muli %arg0, %c128_i32 : i32
    %9 = tpu.iota {dimensions = array<i32: 0>} : vector<128x1xi32>
    %10 = vector.broadcast %8 : i32 to vector<128x1xi32>
    %11 = arith.addi %10, %9 : vector<128x1xi32>
    %c256_i32 = arith.constant 256 : i32
    %12 = arith.muli %arg1, %c256_i32 : i32
    %13 = tpu.iota {dimensions = array<i32: 1>} : vector<1x256xi32>
    %14 = vector.broadcast %12 : i32 to vector<1x256xi32>
    %15 = arith.addi %14, %13 : vector<1x256xi32>
    %c0_5 = arith.constant 0 : index
    %c0_6 = arith.constant 0 : index
    %16 = vector.load %arg4[%c0_5, %c0_6] : memref<128x1xi32, #tpu.memory_space<vmem>>, vector<128x1xi32>
    %c0_7 = arith.constant 0 : index
    %c0_8 = arith.constant 0 : index
    %17 = vector.load %arg8[%c0_7, %c0_8] : memref<128x1xf32, #tpu.memory_space<vmem>>, vector<128x1xf32>
    %18 = vector.broadcast %15 : vector<1x256xi32> to vector<128x256xi32>
    %19 = vector.broadcast %16 : vector<128x1xi32> to vector<128x256xi32>
    %20 = arith.cmpi eq, %18, %19 : vector<128x256xi32>
    %cst_9 = arith.constant 0.000000e+00 : f32
    %21 = vector.broadcast %cst_9 : f32 to vector<128x256xf32>
    %22 = arith.select %20, %7, %21 : vector<128x256xi1>, vector<128x256xf32>
    %cst_10 = arith.constant dense<0.000000e+00> : vector<128xf32>
    %23 = vector.multi_reduction <add>, %22, %cst_10 [1] : vector<128x256xf32> to vector<128xf32>
    %24 = vector.shape_cast %23 : vector<128xf32> to vector<128x1xf32>
    %25 = arith.addf %17, %24 : vector<128x1xf32>
    %c0_11 = arith.constant 0 : index
    %c0_12 = arith.constant 0 : index
    %26 = vector.load %arg8[%c0_11, %c0_12] : memref<128x1xf32, #tpu.memory_space<vmem>>, vector<128x1xf32>
    tpu.vector_store %arg8[%c0_11, %c0_12], %25 {strides = array<i32>} : memref<128x1xf32, #tpu.memory_space<vmem>>, vector<128x1xf32>,
    %27 = vector.broadcast %11 : vector<128x1xi32> to vector<128x256xi32>
    %28 = vector.broadcast %15 : vector<1x256xi32> to vector<128x256xi32>
    %29 = arith.cmpi eq, %27, %28 : vector<128x256xi32>
    %c256_i32_13 = arith.constant 256 : i32
    %30 = vector.broadcast %c256_i32_13 : i32 to vector<1x256xi32>
    %31 = arith.cmpi sge, %15, %30 : vector<1x256xi32>
    %32 = vector.broadcast %31 : vector<1x256xi1> to vector<128x256xi1>
    %33 = arith.ori %29, %32 : vector<128x256xi1>
    %cst_14 = arith.constant -1.000000e+30 : f32
    %34 = vector.broadcast %cst_14 : f32 to vector<128x256xf32>
    %35 = arith.select %33, %34, %7 : vector<128x256xi1>, vector<128x256xf32>
    %c0_15 = arith.constant 0 : index
    %c0_16 = arith.constant 0 : index
    %36 = vector.load %arg6[%c0_15, %c0_16] : memref<128x1xf32, #tpu.memory_space<vmem>>, vector<128x1xf32>
    %cst_17 = arith.constant dense<0xFF800000> : vector<128xf32>
    %37 = vector.multi_reduction <maximumf>, %35, %cst_17 [1] : vector<128x256xf32> to vector<128xf32>
    %38 = vector.shape_cast %37 : vector<128xf32> to vector<128x1xf32>
    %39 = arith.maximumf %36, %38 : vector<128x1xf32>
    %40 = arith.subf %36, %39 : vector<128x1xf32>
    %41 = math.exp %40 : vector<128x1xf32>
    %c0_18 = arith.constant 0 : index
    %c0_19 = arith.constant 0 : index
    %42 = vector.load %arg7[%c0_18, %c0_19] : memref<128x1xf32, #tpu.memory_space<vmem>>, vector<128x1xf32>
    %43 = arith.mulf %41, %42 : vector<128x1xf32>
    %44 = vector.broadcast %39 : vector<128x1xf32> to vector<128x256xf32>
    %45 = arith.subf %35, %44 : vector<128x256xf32>
    %46 = math.exp %45 : vector<128x256xf32>
    %cst_20 = arith.constant dense<0.000000e+00> : vector<128xf32>
    %47 = vector.multi_reduction <add>, %46, %cst_20 [1] : vector<128x256xf32> to vector<128xf32>
    %48 = vector.shape_cast %47 : vector<128xf32> to vector<128x1xf32>
    %49 = arith.addf %43, %48 : vector<128x1xf32>
    %c0_21 = arith.constant 0 : index
    %c0_22 = arith.constant 0 : index
    %50 = vector.load %arg7[%c0_21, %c0_22] : memref<128x1xf32, #tpu.memory_space<vmem>>, vector<128x1xf32>
    tpu.vector_store %arg7[%c0_21, %c0_22], %49 {strides = array<i32>} : memref<128x1xf32, #tpu.memory_space<vmem>>, vector<128x1xf32>,
    %c0_23 = arith.constant 0 : index
    %c0_24 = arith.constant 0 : index
    %51 = vector.load %arg6[%c0_23, %c0_24] : memref<128x1xf32, #tpu.memory_space<vmem>>, vector<128x1xf32>
    tpu.vector_store %arg6[%c0_23, %c0_24], %39 {strides = array<i32>} : memref<128x1xf32, #tpu.memory_space<vmem>>, vector<128x1xf32>,
    %c0_i32_25 = arith.constant 0 : i32
    %52 = arith.cmpi eq, %arg1, %c0_i32_25 : i32
    %53 = arith.extui %52 : i1 to i32
    %c0_i32_26 = arith.constant 0 : i32
    %54 = arith.cmpi ne, %53, %c0_i32_26 : i32
    scf.if %54 {
      %c256_i32_27 = arith.constant 256 : i32
      %55 = vector.broadcast %c256_i32_27 : i32 to vector<128x1xi32>
      %56 = arith.cmpi slt, %16, %55 : vector<128x1xi32>
      %c0_28 = arith.constant 0 : index
      %c0_29 = arith.constant 0 : index
      %57 = vector.load %arg6[%c0_28, %c0_29] : memref<128x1xf32, #tpu.memory_space<vmem>>, vector<128x1xf32>
      %c0_30 = arith.constant 0 : index
      %c0_31 = arith.constant 0 : index
      %58 = vector.load %arg7[%c0_30, %c0_31] : memref<128x1xf32, #tpu.memory_space<vmem>>, vector<128x1xf32>
      %59 = math.log %58 : vector<128x1xf32>
      %60 = arith.addf %57, %59 : vector<128x1xf32>
      %c0_32 = arith.constant 0 : index
      %c0_33 = arith.constant 0 : index
      %61 = vector.load %arg8[%c0_32, %c0_33] : memref<128x1xf32, #tpu.memory_space<vmem>>, vector<128x1xf32>
      %62 = arith.subf %60, %61 : vector<128x1xf32>
      %cst_34 = arith.constant 0x7F800000 : f32
      %63 = vector.broadcast %cst_34 : f32 to vector<128x1xf32>
      %64 = arith.select %56, %62, %63 : vector<128x1xi1>, vector<128x1xf32>
      %c0_35 = arith.constant 0 : index
      %c0_36 = arith.constant 0 : index
      %65 = vector.load %arg5[%c0_35, %c0_36] : memref<128x1xf32, #tpu.memory_space<vmem>>, vector<128x1xf32>
      tpu.vector_store %arg5[%c0_35, %c0_36], %64 {strides = array<i32>} : memref<128x1xf32, #tpu.memory_space<vmem>>, vector<128x1xf32>,
    } else {
    }
    return
  }
  func.func @transform_0(%arg0: i32, %arg1: i32) -> (i32, i32) {
    %c0_i32 = arith.constant 0 : i32
    %c0_i32_0 = arith.constant 0 : i32
    return %arg0, %c0_i32 : i32, i32
  }
  func.func @transform_1(%arg0: i32, %arg1: i32) -> (i32, i32) {
    %c0_i32 = arith.constant 0 : i32
    %c0_i32_0 = arith.constant 0 : i32
    return %c0_i32, %arg1 : i32, i32
  }
  func.func @transform_2(%arg0: i32, %arg1: i32) -> (i32, i32) {
    %c0_i32 = arith.constant 0 : i32
    %c0_i32_0 = arith.constant 0 : i32
    return %arg0, %c0_i32 : i32, i32
  }
  func.func @transform_3(%arg0: i32, %arg1: i32) -> (i32, i32) {
    %c0_i32 = arith.constant 0 : i32
    %c0_i32_0 = arith.constant 0 : i32
    return %arg0, %c0_i32 : i32, i32
  }
}

</mosaic_0001>

<bundles_post_ra>
// kernel: tpu_custom_call.1
= control target key start
LH: loop header
LB: loop body
LE: loop exit
PB: predicated region body
PF: predicated region fallthrough
CT: control target
= control target key end

     0   :  { %s1847_s12 = smov 0   ;;  %s1849_s13 = smov 0   ;;  %s2813_s0 = inlined_call_operand.vmem [shape: f32[256,32], index: 0, kind: input, shape index: {}]   ;;  %s2814_s1 = inlined_call_operand.vmem [shape: f32[32,256], index: 1, kind: input, shape index: {}]   ;;  %s2815_s2 = inlined_call_operand.vmem [shape: s32[256,1], index: 2, kind: input, shape index: {}]   ;;  %s2816_s3 = inlined_call_operand.vmem [shape: f32[256,1], index: 3, kind: output, shape index: {}]  }
   0x1   :  { %s1851_s14 = smov 0  }
   0x2 LB: > { %s25_s15 = sadd.s32 1, %s1818_s13  ;;  %p1594_p0 = scmp.ge.s32.totalorder %s1822_s14, 1  ;;  %s1822_s14 = sphi %s1851_s14, %s13_s14   ;;  %s1818_s13 = sphi %s1849_s13, %s2972_s13   ;;  %s1814_s12 = sphi %s1847_s12, %s2971_s12  }
   0x3   : > { %p27_p1 = scmp.ge.s32.totalorder %s25_s15, 2  ;;  %p172_p2 = scmp.lt.s32.totalorder %s1822_s14, 3 }
   0x5   : > { %s2974_s15 = smov (%p27_p1, %s25_s15), 0  ;;  %p173_p3 = pnand %p1594_p0, %p172_p2 }
   0x7   : > { %176 = sbr.rel (%p173_p3) target bundleno = 810 (0x32a), region = 32 }
   0xe   : > { %v316_v0 = vld [vmem:[%s2814_s1 + $0x8] sm:$0xff]  ;;  %v318_v1 = vld [vmem:[%s2814_s1 + $0x18] sm:$0xff]  ;;  %v315_v2 = vld [vmem:[%s2814_s1] sm:$0xff]  ;;  %s1595_s22 = sshll.u32 %s1814_s12, 4  ;;  %v1824_v7 = vmov 0.0   ;;  %v1825_v12 = vmov 0   ;;  %v534_v49 = vlaneseq }
   0xf   : > { %v1620_v3 = vpack.c.bf16 %v318_v1, %v316_v0  ;;  %v317_v4 = vld [vmem:[%s2814_s1 + $0x10] sm:$0xff]  ;;  %v320_v5 = vld [vmem:[%s2814_s1 + $0x28] sm:$0xff]  ;;  %v322_v6 = vld [vmem:[%s2814_s1 + $0x38] sm:$0xff]  ;;  %436 = vmatprep.mubr.f32.mxu0 %v1824_v7  ;;  %484 = vmatprep.mubr.f32.mxu1 %v1824_v7  ;;  %p207_p4 = scmp.lt.s32.totalorder %s1595_s22, 31  ;;  %vm323_vm0 = vcmask 261120   ;;  %s1617_s17 = sshll.u32 %s1814_s12, 7 }
  0x10   : > { %v1622_v8 = vpack.c.bf16 %v317_v4, %v315_v2  ;;  %v1624_v9 = vpack.c.bf16 %v322_v6, %v320_v5  ;;  %v319_v10 = vld [vmem:[%s2814_s1 + $0x20] sm:$0xff]  ;;  %v321_v11 = vld [vmem:[%s2814_s1 + $0x30] sm:$0xff]  ;;  %1659 = vset.pattern.permute.xlu0 %v1825_v12  ;;  %1660 = vset.pattern.permute.xlu1 %v1825_v12  ;;  %v1958_v50 = vshrl.u32 %v534_v49, 7  ;;  %v1962_v53 = vstv %s1617_s17 }
  0x11   : > { %1621 = vmatprep.subr.bf16.mxu0 %v1620_v3  ;;  %1628 = vmatprep.subr.bf16.mxu1 %v1620_v3  ;;  %s2976_s22 = smov (!%p207_p4, %s1595_s22), 31  ;;  %v1626_v13 = vpack.c.bf16 %v321_v11, %v319_v10  ;;  %vm234_vm1 = vcmask 7168   ;;  %v1826_v56 = vmov -1e+30   ;;  %v2051_v58 = vand.u32 127, %v534_v49 }
  0x12   : > { %1623 = vmatpush1.bf16.msra.mxu0 %v1622_v8  ;;  %1630 = vmatpush1.bf16.msra.mxu1 %v1622_v8  ;;  %s1894_s6 = sshll.u32 %s2976_s22, 3  ;;  %v542_v51 = vadd.s32 56, %v1958_v50  ;;  %v550_v52 = vadd.s32 120, %v1958_v50  ;;  %243 = vst.msk [vmem:[#allocation2 + $0x40] sm:$0xff] %vm234_vm1, %v1826_v56  ;;  %235 = vst.msk [vmem:[#allocation2] sm:$0xff] %vm234_vm1, %v1826_v56  ;;  %v543_v57 = vadd.s32 64, %v1958_v50  ;;  %v552_v63 = vadd.s32 %v1962_v53, %v1958_v50 }
  0x13   : > { %1625 = vmatprep.subr.bf16.mxu0 %v1624_v9  ;;  %1629 = vmatprep.subr.bf16.mxu1 %v1624_v9  ;;  %s1900_s9 = scalar_lea.vmem %s2813_s0, %s1894_s6  ;;  %s1910_s16 = scalar_lea.vmem %s2815_s2, %s1894_s6  ;;  %236 = vst.msk [vmem:[#allocation2 + $0x8] sm:$0xff] %vm234_vm1, %v1826_v56  ;;  %237 = vst.msk [vmem:[#allocation2 + $0x10] sm:$0xff] %vm234_vm1, %v1826_v56  ;;  %v536_v59 = vadd.s32 8, %v1958_v50  ;;  %v544_v60 = vadd.s32 72, %v1958_v50  ;;  %v537_v61 = vadd.s32 16, %v1958_v50  ;;  %v2060_v1 = vadd.s32 128, %v2051_v58 }
  0x14   : > { %v283_v14 = vld [vmem:[%s1900_s9] sm:$0xff]  ;;  %v284_v18 = vld [vmem:[%s1900_s9 + $0x8] sm:$0xff]  ;;  %v285_v22 = vld [vmem:[%s1900_s9 + $0x10] sm:$0xff]  ;;  %v1965_v54 = vadd.s32 %v1962_v53, %v542_v51  ;;  %v1968_v55 = vadd.s32 %v1962_v53, %v550_v52  ;;  %238 = vst.msk [vmem:[#allocation2 + $0x18] sm:$0xff] %vm234_vm1, %v1826_v56  ;;  %v560_v0 = vadd.s32 %v1962_v53, %v543_v57  ;;  %v545_v2 = vadd.s32 80, %v1958_v50  ;;  %s2710_s19 = scalar_lea.vmem %s2816_s3, %s1894_s6 }
  0x15   : > { %v291_v15 = vld [vmem:[%s1900_s9 + $0x40] sm:$0xff]  ;;  %v299_v16 = vmul.f32 10.0, %v283_v14  ;;  %v292_v19 = vld [vmem:[%s1900_s9 + $0x48] sm:$0xff]  ;;  %v300_v20 = vmul.f32 10.0, %v284_v18  ;;  %v293_v23 = vld [vmem:[%s1900_s9 + $0x50] sm:$0xff]  ;;  %v301_v27 = vmul.f32 10.0, %v285_v22  ;;  %v553_v3 = vadd.s32 %v1962_v53, %v536_v59 }
  0x16   : > { %1627 = vmatpush1.bf16.msra.mxu0 %v1626_v13  ;;  %1631 = vmatpush1.bf16.msra.mxu1 %v1626_v13  ;;  %v307_v17 = vmul.f32 10.0, %v291_v15  ;;  %v308_v21 = vmul.f32 10.0, %v292_v19  ;;  %v575_v24 = vld [vmem:[%s1910_s16] sm:$0xff]  ;;  %v577_v25 = vld [vmem:[%s1910_s16 + $0x10] sm:$0xff]  ;;  %v576_v26 = vld [vmem:[%s1910_s16 + $0x8] sm:$0xff]  ;;  %v309_v28 = vmul.f32 10.0, %v293_v23  ;;  %v561_v4 = vadd.s32 %v1962_v53, %v544_v60 }
  0x17   : > { %608 = vperm.xlu0 %1659, %v575_v24   ;;  %614 = vperm.xlu1 %1660, %v577_v25   ;;  %v286_v29 = vld [vmem:[%s1900_s9 + $0x18] sm:$0xff]  ;;  %v287_v33 = vld [vmem:[%s1900_s9 + $0x20] sm:$0xff]  ;;  %v288_v37 = vld [vmem:[%s1900_s9 + $0x28] sm:$0xff]  ;;  %239 = vst.msk [vmem:[#allocation2 + $0x20] sm:$0xff] %vm234_vm1, %v1826_v56  ;;  %v538_v5 = vadd.s32 24, %v1958_v50  ;;  %v2067_v6 = vadd.s32 %v1962_v53, %v537_v61  ;;  %vm800_vm2 = vcmp.eq.s32.totalorder %v552_v63, %v2051_v58  ;;  %v546_v12 = vadd.s32 88, %v1958_v50 }
  0x18   : > { %v294_v30 = vld [vmem:[%s1900_s9 + $0x58] sm:$0xff]  ;;  %v302_v31 = vmul.f32 10.0, %v286_v29  ;;  %v295_v34 = vld [vmem:[%s1900_s9 + $0x60] sm:$0xff]  ;;  %v303_v35 = vmul.f32 10.0, %v287_v33  ;;  %v296_v38 = vld [vmem:[%s1900_s9 + $0x68] sm:$0xff]  ;;  %v304_v39 = vmul.f32 10.0, %v288_v37  ;;  %vm816_vm3 = vcmp.eq.s32.totalorder %v560_v0, %v2051_v58 }
  0x19   : > { %1601 = vmatmul.mubr.msk.f32.vlgmr.msra.gmra.mrb[0].mxu0 %vm323_vm0, %v299_v16  ;;  %1609 = vmatmul.mubr.msk.f32.vlgmr.msra.gmra.mrb[0].mxu1 %vm323_vm0, %v307_v17  ;;  %v310_v32 = vmul.f32 10.0, %v294_v30  ;;  %v311_v36 = vmul.f32 10.0, %v295_v34  ;;  %v312_v40 = vmul.f32 10.0, %v296_v38  ;;  %v289_v41 = vld [vmem:[%s1900_s9 + $0x30] sm:$0xff]  ;;  %v290_v45 = vld [vmem:[%s1900_s9 + $0x38] sm:$0xff]  ;;  %240 = vst.msk [vmem:[#allocation2 + $0x28] sm:$0xff] %vm234_vm1, %v1826_v56  ;;  %vm801_vm5 = vcmp.eq.s32.totalorder %v552_v63, %v2060_v1 }
  0x1a   : > { %442 = vmatprep.mubr.f32.mxu0 %v1824_v7  ;;  %490 = vmatprep.mubr.f32.mxu1 %v1824_v7  ;;  %v297_v42 = vld [vmem:[%s1900_s9 + $0x70] sm:$0xff]  ;;  %v305_v43 = vmul.f32 10.0, %v289_v41  ;;  %v298_v46 = vld [vmem:[%s1900_s9 + $0x78] sm:$0xff]  ;;  %v306_v47 = vmul.f32 10.0, %v290_v45  ;;  %241 = vst.msk [vmem:[#allocation2 + $0x30] sm:$0xff] %vm234_vm1, %v1826_v56  ;;  %242 = vst.msk [vmem:[#allocation2 + $0x38] sm:$0xff] %vm234_vm1, %v1826_v56  ;;  %vm817_vm6 = vcmp.eq.s32.totalorder %v560_v0, %v2060_v1 }
  0x1b   : > { %611 = vperm.xlu0 %1659, %v576_v26   ;;  %v313_v44 = vmul.f32 10.0, %v297_v42  ;;  %v314_v48 = vmul.f32 10.0, %v298_v46  ;;  %244 = vst.msk [vmem:[#allocation2 + $0x48] sm:$0xff] %vm234_vm1, %v1826_v56  ;;  %245 = vst.msk [vmem:[#allocation2 + $0x50] sm:$0xff] %vm234_vm1, %v1826_v56  ;;  %vm802_vm8 = vcmp.eq.s32.totalorder %v553_v3, %v2051_v58  ;;  %vm818_vm9 = vcmp.eq.s32.totalorder %v561_v4, %v2051_v58 }
  0x1c   : > { %246 = vst.msk [vmem:[#allocation2 + $0x58] sm:$0xff] %vm234_vm1, %v1826_v56  ;;  %247 = vst.msk [vmem:[#allocation2 + $0x60] sm:$0xff] %vm234_vm1, %v1826_v56  ;;  %v2081_v9 = vadd.s32 %v1962_v53, %v538_v5  ;;  %vm819_vm10 = vcmp.eq.s32.totalorder %v561_v4, %v2060_v1  ;;  %vm803_vm11 = vcmp.eq.s32.totalorder %v553_v3, %v2060_v1  ;;  %v548_v60 = vadd.s32 104, %v1958_v50 }
  0x1d   : > { %1602 = vmatmul.mubr.msk.f32.gmra.mrb[2].mxu0 %vm323_vm0, %v300_v20  ;;  %1610 = vmatmul.mubr.msk.f32.gmra.mrb[2].mxu1 %vm323_vm0, %v308_v21  ;;  %248 = vst.msk [vmem:[#allocation2 + $0x68] sm:$0xff] %vm234_vm1, %v1826_v56  ;;  %249 = vst.msk [vmem:[#allocation2 + $0x70] sm:$0xff] %vm234_vm1, %v1826_v56  ;;  %vm804_vm12 = vcmp.eq.s32.totalorder %v2067_v6, %v2051_v58  ;;  %vm805_vm13 = vcmp.eq.s32.totalorder %v2067_v6, %v2060_v1  ;;  %v541_v6 = vadd.s32 48, %v1958_v50 }
  0x1e   : > { %448 = vmatprep.mubr.f32.mxu0 %v1824_v7  ;;  %496 = vmatprep.mubr.f32.mxu1 %v1824_v7  ;;  %250 = vst.msk [vmem:[#allocation2 + $0x78] sm:$0xff] %vm234_vm1, %v1826_v56  ;;  %251 = vst.msk [vmem:[#allocation3] sm:$0xff] %vm234_vm1, %v1824_v7 }
  0x1f   : > { %252 = vst.msk [vmem:[#allocation3 + $0x8] sm:$0xff] %vm234_vm1, %v1824_v7  ;;  %253 = vst.msk [vmem:[#allocation3 + $0x10] sm:$0xff] %vm234_vm1, %v1824_v7 }
  0x20   : > { %254 = vst.msk [vmem:[#allocation3 + $0x18] sm:$0xff] %vm234_vm1, %v1824_v7  ;;  %255 = vst.msk [vmem:[#allocation3 + $0x20] sm:$0xff] %vm234_vm1, %v1824_v7 }
  0x21   : > { %1603 = vmatmul.mubr.msk.f32.gmra.mrb[4].mxu0 %vm323_vm0, %v301_v27  ;;  %1611 = vmatmul.mubr.msk.f32.gmra.mrb[4].mxu1 %vm323_vm0, %v309_v28  ;;  %256 = vst.msk [vmem:[#allocation3 + $0x28] sm:$0xff] %vm234_vm1, %v1824_v7  ;;  %257 = vst.msk [vmem:[#allocation3 + $0x30] sm:$0xff] %vm234_vm1, %v1824_v7  ;;  %v539_v27 = vadd.s32 32, %v1958_v50 }
  0x22   : > { %454 = vmatprep.mubr.f32.mxu0 %v1824_v7  ;;  %502 = vmatprep.mubr.f32.mxu1 %v1824_v7  ;;  %258 = vst.msk [vmem:[#allocation3 + $0x38] sm:$0xff] %vm234_vm1, %v1824_v7  ;;  %259 = vst.msk [vmem:[#allocation3 + $0x40] sm:$0xff] %vm234_vm1, %v1824_v7 }
  0x23   : > { %260 = vst.msk [vmem:[#allocation3 + $0x48] sm:$0xff] %vm234_vm1, %v1824_v7  ;;  %261 = vst.msk [vmem:[#allocation3 + $0x50] sm:$0xff] %vm234_vm1, %v1824_v7  ;;  %v556_v42 = vadd.s32 %v1962_v53, %v539_v27 }
  0x24   : > { %262 = vst.msk [vmem:[#allocation3 + $0x58] sm:$0xff] %vm234_vm1, %v1824_v7  ;;  %263 = vst.msk [vmem:[#allocation3 + $0x60] sm:$0xff] %vm234_vm1, %v1824_v7 }
  0x25   : > { %1604 = vmatmul.mubr.msk.f32.gmra.mrb[6].mxu0 %vm323_vm0, %v302_v31  ;;  %1612 = vmatmul.mubr.msk.f32.gmra.mrb[6].mxu1 %vm323_vm0, %v310_v32  ;;  %264 = vst.msk [vmem:[#allocation3 + $0x68] sm:$0xff] %vm234_vm1, %v1824_v7  ;;  %265 = vst.msk [vmem:[#allocation3 + $0x70] sm:$0xff] %vm234_vm1, %v1824_v7  ;;  %v563_v32 = vadd.s32 %v1962_v53, %v546_v12 }
  0x26   : > { %460 = vmatprep.mubr.f32.mxu0 %v1824_v7  ;;  %508 = vmatprep.mubr.f32.mxu1 %v1824_v7  ;;  %266 = vst.msk [vmem:[#allocation3 + $0x78] sm:$0xff] %vm234_vm1, %v1824_v7  ;;  %267 = vst.msk [vmem:[#allocation4] sm:$0xff] %vm234_vm1, %v1824_v7 }
  0x27   : > { %268 = vst.msk [vmem:[#allocation4 + $0x8] sm:$0xff] %vm234_vm1, %v1824_v7  ;;  %269 = vst.msk [vmem:[#allocation4 + $0x10] sm:$0xff] %vm234_vm1, %v1824_v7 }
  0x28   : > { %270 = vst.msk [vmem:[#allocation4 + $0x18] sm:$0xff] %vm234_vm1, %v1824_v7  ;;  %271 = vst.msk [vmem:[#allocation4 + $0x20] sm:$0xff] %vm234_vm1, %v1824_v7 }
  0x29   : > { %1605 = vmatmul.mubr.msk.f32.gmra.mrb[8].mxu0 %vm323_vm0, %v303_v35  ;;  %1613 = vmatmul.mubr.msk.f32.gmra.mrb[8].mxu1 %vm323_vm0, %v311_v36  ;;  %272 = vst.msk [vmem:[#allocation4 + $0x28] sm:$0xff] %vm234_vm1, %v1824_v7  ;;  %273 = vst.msk [vmem:[#allocation4 + $0x30] sm:$0xff] %vm234_vm1, %v1824_v7  ;;  %v547_v35 = vadd.s32 96, %v1958_v50 }
  0x2a   : > { %466 = vmatprep.mubr.f32.mxu0 %v1824_v7  ;;  %514 = vmatprep.mubr.f32.mxu1 %v1824_v7  ;;  %274 = vst.msk [vmem:[#allocation4 + $0x38] sm:$0xff] %vm234_vm1, %v1824_v7  ;;  %275 = vst.msk [vmem:[#allocation4 + $0x40] sm:$0xff] %vm234_vm1, %v1824_v7 }
  0x2b   : > { %276 = vst.msk [vmem:[#allocation4 + $0x48] sm:$0xff] %vm234_vm1, %v1824_v7  ;;  %277 = vst.msk [vmem:[#allocation4 + $0x50] sm:$0xff] %vm234_vm1, %v1824_v7  ;;  %v564_v56 = vadd.s32 %v1962_v53, %v547_v35 }
  0x2c   : > { %278 = vst.msk [vmem:[#allocation4 + $0x58] sm:$0xff] %vm234_vm1, %v1824_v7  ;;  %279 = vst.msk [vmem:[#allocation4 + $0x60] sm:$0xff] %vm234_vm1, %v1824_v7 }
  0x2d   : > { %1606 = vmatmul.mubr.msk.f32.gmra.mrb[10].mxu0 %vm323_vm0, %v304_v39  ;;  %1614 = vmatmul.mubr.msk.f32.gmra.mrb[10].mxu1 %vm323_vm0, %v312_v40  ;;  %280 = vst.msk [vmem:[#allocation4 + $0x68] sm:$0xff] %vm234_vm1, %v1824_v7  ;;  %281 = vst.msk [vmem:[#allocation4 + $0x70] sm:$0xff] %vm234_vm1, %v1824_v7 }
  0x2e   : > { %472 = vmatprep.mubr.f32.mxu0 %v1824_v7  ;;  %520 = vmatprep.mubr.f32.mxu1 %v1824_v7  ;;  %282 = vst.msk [vmem:[#allocation4 + $0x78] sm:$0xff] %vm234_vm1, %v1824_v7 }
  0x31   : > { %1607 = vmatmul.mubr.msk.f32.gmra.mrb[12].mxu0 %vm323_vm0, %v305_v43  ;;  %1615 = vmatmul.mubr.msk.f32.gmra.mrb[12].mxu1 %vm323_vm0, %v313_v44  ;;  %v540_v43 = vadd.s32 40, %v1958_v50 }
  0x32   : > { %478 = vmatprep.mubr.f32.mxu0 %v1824_v7  ;;  %526 = vmatprep.mubr.f32.mxu1 %v1824_v7  ;;  %v2075_v7 = vadd.s32 %v1962_v53, %v545_v2 }
  0x33   : > { %v557_v5 = vadd.s32 %v1962_v53, %v540_v43 }
  0x34   : > { %vm820_vm15 = vcmp.eq.s32.totalorder %v2075_v7, %v2051_v58 }
  0x35   : > { %1608 = vmatmul.mubr.msk.f32.gmra.mrb[14].mxu0 %vm323_vm0, %v306_v47  ;;  %1616 = vmatmul.mubr.msk.f32.gmra.mrb[14].mxu1 %vm323_vm0, %v314_v48  ;;  %vm806_vm0 = vcmp.eq.s32.totalorder %v2081_v9, %v2051_v58 }
  0x96   : > { %v609_v62 = vpop.permute.xlu0 %608  ;;  %v615_v22 = vpop.permute.xlu1 %614 }
  0x97   : > { %vm655_vm4 = vcmp.eq.s32.totalorder %v2051_v58, %v609_v62  ;;  %vm656_vm7 = vcmp.eq.s32.totalorder %v2060_v1, %v609_v62 }
  0x9a   : > { %v612_v8 = vpop.permute.xlu0 %611 }
  0x9b   : > { %vm657_vm14 = vcmp.eq.s32.totalorder %v2051_v58, %v612_v8 }
  0xec   : > { %v438_v10 = vpop.f32.mrb[0].mxu0  ;;  %v2083_v11 = vpop.f32.mrb[0].mxu1 }
  0xed   : > { %v687_v13 = vsel %vm655_vm4, %v438_v10, 0.0  ;;  %v2092_v14 = vsel %vm800_vm2, -1e+30, %v438_v10  ;;  %v2097_v15 = vsel %vm816_vm3, -1e+30, %v2083_v11  ;;  %v440_v16 = vpop.f32.mrb[1].mxu0  ;;  %vm658_vm2 = vcmp.eq.s32.totalorder %v2060_v1, %v612_v8 }
  0xee   : > { %v688_v17 = vsel %vm656_vm7, %v440_v16, 0.0  ;;  %v2105_v18 = vsel %vm801_vm5, -1e+30, %v440_v16  ;;  %v2107_v19 = vpop.f32.mrb[1].mxu1  ;;  %vm821_vm3 = vcmp.eq.s32.totalorder %v2075_v7, %v2060_v1  ;;  %vm659_vm4 = vcmp.eq.s32.totalorder %v2051_v58, %v615_v22 }
  0xef   : > { %v2115_v20 = vsel %vm817_vm6, -1e+30, %v2107_v19  ;;  %v918_v21 = vmax.f32 %v2092_v14, %v2105_v18  ;;  %v2121_v23 = vadd.f32 %v688_v17, %v687_v13  ;;  %vm807_vm5 = vcmp.eq.s32.totalorder %v2081_v9, %v2060_v1 }
  0xf0   : > { %v444_v24 = vpop.f32.mrb[2].mxu0  ;;  %v2124_v25 = vpop.f32.mrb[2].mxu1  ;;  %v942_v26 = vmax.f32 %v2097_v15, %v2115_v20  ;;  %vm660_vm6 = vcmp.eq.s32.totalorder %v2060_v1, %v615_v22  ;;  %vm822_vm7 = vcmp.eq.s32.totalorder %v563_v32, %v2051_v58  ;;  %v565_v9 = vadd.s32 %v1962_v53, %v548_v60 }
  0xf1   : > { %v689_v28 = vsel %vm657_vm14, %v444_v24, 0.0  ;;  %v2133_v29 = vsel %vm802_vm8, -1e+30, %v444_v24  ;;  %v2138_v30 = vsel %vm818_vm9, -1e+30, %v2124_v25  ;;  %v2140_v31 = vpop.f32.mrb[3].mxu1  ;;  %919 = vmax.xlane.f32.xlu0 %v918_v21  ;;  %vm823_vm8 = vcmp.eq.s32.totalorder %v563_v32, %v2060_v1 }
  0xf2   : > { %2863 = vst [vmem:[#allocation5_spill] sm:$0xff] %v2140_v31  ;;  %943 = vmax.xlane.f32.xlu1 %v942_v26  ;;  %v2146_v33 = vsel %vm819_vm10, -1e+30, %v2140_v31  ;;  %v446_v34 = vpop.f32.mrb[3].mxu0  ;;  %vm808_vm9 = vcmp.eq.s32.totalorder %v556_v42, %v2051_v58  ;;  %vm809_vm10 = vcmp.eq.s32.totalorder %v556_v42, %v2060_v1  ;;  %v549_v13 = vadd.s32 112, %v1958_v50 }
  0xf3   : > { %v690_v36 = vsel %vm658_vm2, %v446_v34, 0.0  ;;  %v2156_v37 = vsel %vm803_vm11, -1e+30, %v446_v34  ;;  %v945_v38 = vmax.f32 %v2138_v30, %v2146_v33  ;;  %vm824_vm11 = vcmp.eq.s32.totalorder %v564_v56, %v2051_v58 }
  0xf4   : > { %v450_v39 = vpop.f32.mrb[4].mxu0  ;;  %v921_v40 = vmax.f32 %v2133_v29, %v2156_v37  ;;  %v2163_v41 = vpop.f32.mrb[4].mxu1  ;;  %v2167_v44 = vadd.f32 %v690_v36, %v689_v28  ;;  %vm811_vm14 = vcmp.eq.s32.totalorder %v557_v5, %v2060_v1  ;;  %v558_v32 = vadd.s32 %v1962_v53, %v541_v6 }
  0xf5   : > { %v691_v45 = vsel %vm659_vm4, %v450_v39, 0.0  ;;  %v2172_v46 = vsel %vm804_vm12, -1e+30, %v450_v39  ;;  %946 = vmax.xlane.f32.xlu0 %v945_v38  ;;  %v452_v47 = vpop.f32.mrb[5].mxu0  ;;  %v2178_v48 = vsel %vm820_vm15, -1e+30, %v2163_v41  ;;  %vm825_vm12 = vcmp.eq.s32.totalorder %v564_v56, %v2060_v1 }
  0xf6   : > { %922 = vmax.xlane.f32.xlu1 %v921_v40  ;;  %v692_v49 = vsel %vm660_vm6, %v452_v47, 0.0  ;;  %v2184_v51 = vsel %vm805_vm13, -1e+30, %v452_v47  ;;  %v2186_v52 = vpop.f32.mrb[5].mxu1  ;;  %vm810_vm13 = vcmp.eq.s32.totalorder %v557_v5, %v2051_v58  ;;  %vm826_vm15 = vcmp.eq.s32.totalorder %v565_v9, %v2051_v58 }
  0xf7   : > { %v2194_v57 = vsel %vm821_vm3, -1e+30, %v2186_v52  ;;  %v924_v59 = vmax.f32 %v2172_v46, %v2184_v51  ;;  %v2199_v61 = vadd.f32 %v692_v49, %v691_v45  ;;  %v566_v35 = vadd.s32 %v1962_v53, %v549_v13 }
  0xf8   : > { %v2201_v62 = vpop.f32.mrb[6].mxu0  ;;  %v2203_v63 = vpop.f32.mrb[6].mxu1  ;;  %v948_v0 = vmax.f32 %v2178_v48, %v2194_v57  ;;  %vm812_vm2 = vcmp.eq.s32.totalorder %v558_v32, %v2051_v58  ;;  %vm813_vm3 = vcmp.eq.s32.totalorder %v558_v32, %v2060_v1  ;;  %vm814_vm6 = vcmp.eq.s32.totalorder %v1965_v54, %v2051_v58 }
  0xf9   : > { %2864 = vst [vmem:[#allocation6_spill] sm:$0xff] %v2203_v63  ;;  %v2212_v2 = vsel %vm806_vm0, -1e+30, %v2201_v62  ;;  %925 = vmax.xlane.f32.xlu0 %v924_v59  ;;  %v2214_v3 = vpop.f32.mrb[7].mxu0  ;;  %v2216_v4 = vpop.f32.mrb[7].mxu1  ;;  %vm827_vm0 = vcmp.eq.s32.totalorder %v565_v9, %v2060_v1  ;;  %vm828_vm4 = vcmp.eq.s32.totalorder %v566_v35, %v2051_v58 }
  0xfa   : > { %2865 = vst [vmem:[#allocation7_spill] sm:$0xff] %v2216_v4  ;;  %v2225_v7 = vsel %vm807_vm5, -1e+30, %v2214_v3  ;;  %v2230_v8 = vsel %vm822_vm7, -1e+30, %v2203_v63  ;;  %949 = vmax.xlane.f32.xlu1 %v948_v0  ;;  %vm829_vm5 = vcmp.eq.s32.totalorder %v566_v35, %v2060_v1  ;;  %vm830_vm7 = vcmp.eq.s32.totalorder %v1968_v55, %v2051_v58 }
  0xfb   : > { %v2235_v10 = vsel %vm823_vm8, -1e+30, %v2216_v4  ;;  %v927_v12 = vmax.f32 %v2212_v2, %v2225_v7  ;;  %vm815_vm8 = vcmp.eq.s32.totalorder %v1965_v54, %v2060_v1  ;;  %v579_v4 = vld [vmem:[%s1910_s16 + $0x20] sm:$0xff] }
  0xfc   : > { %v2243_v16 = vpop.f32.mrb[8].mxu0  ;;  %v2245_v17 = vpop.f32.mrb[8].mxu1  ;;  %v951_v26 = vmax.f32 %v2230_v8, %v2235_v10 }
  0xfd   : > { %v2250_v21 = vsel %vm808_vm9, -1e+30, %v2243_v16  ;;  %928 = vmax.xlane.f32.xlu0 %v927_v12  ;;  %v2252_v22 = vpop.f32.mrb[9].mxu0  ;;  %v2255_v24 = vpop.f32.mrb[9].mxu1  ;;  %v2266_v27 = vsel %vm824_vm11, -1e+30, %v2245_v17  ;;  %vm831_vm9 = vcmp.eq.s32.totalorder %v1968_v55, %v2060_v1 }
  0xfe   : > { %v2263_v50 = vsel %vm809_vm10, -1e+30, %v2252_v22  ;;  %v2269_v28 = vsel %vm825_vm12, -1e+30, %v2255_v24 }
  0xff   : > { %v930_v34 = vmax.f32 %v2250_v21, %v2263_v50  ;;  %v954_v43 = vmax.f32 %v2266_v27, %v2269_v28 }
 0x100   : > { %v2277_v36 = vpop.f32.mrb[10].mxu0  ;;  %v2279_v38 = vpop.f32.mrb[10].mxu1 }
 0x101   : > { %2866 = vst [vmem:[#allocation8_spill] sm:$0xff] %v2279_v38  ;;  %v2282_v39 = vsel %vm810_vm13, -1e+30, %v2277_v36  ;;  %952 = vmax.xlane.f32.xlu0 %v951_v26  ;;  %931 = vmax.xlane.f32.xlu1 %v930_v34  ;;  %v2284_v40 = vpop.f32.mrb[11].mxu0  ;;  %v2286_v42 = vpop.f32.mrb[11].mxu1 }
 0x102   : > { %2867 = vst [vmem:[#allocation9_spill] sm:$0xff] %v2286_v42  ;;  %v2293_v53 = vsel %vm811_vm14, -1e+30, %v2284_v40  ;;  %v2296_v45 = vsel %vm826_vm15, -1e+30, %v2279_v38 }
 0x103   : > { %2868 = vst [vmem:[#allocation10_spill] sm:$0xff] %v2296_v45  ;;  %v2300_v47 = vsel %vm827_vm0, -1e+30, %v2286_v42  ;;  %v933_v49 = vmax.f32 %v2282_v39, %v2293_v53 }
 0x104   : > { %2869 = vst [vmem:[#allocation11_spill] sm:$0xff] %v2300_v47  ;;  %v2307_v56 = vpop.f32.mrb[12].mxu0  ;;  %v2309_v59 = vpop.f32.mrb[12].mxu1  ;;  %v957_v6 = vmax.f32 %v2296_v45, %v2300_v47  ;;  %v2368_v47 = vld [vmem:[#allocation2] sm:$0xff] }
 0x105   : > { %v2312_v60 = vsel %vm812_vm2, -1e+30, %v2307_v56  ;;  %955 = vmax.xlane.f32.xlu1 %v954_v43  ;;  %934 = vmax.xlane.f32.xlu0 %v933_v49  ;;  %v2314_v0 = vpop.f32.mrb[13].mxu0  ;;  %v2316_v5 = vpop.f32.mrb[13].mxu1  ;;  %v2326_v9 = vsel %vm828_vm4, -1e+30, %v2309_v59 }
 0x106   : > { %v2323_v12 = vsel %vm813_vm3, -1e+30, %v2314_v0  ;;  %v2329_v13 = vsel %vm829_vm5, -1e+30, %v2316_v5  ;;  %2874 = vst [vmem:[#allocation16_spill] sm:$0xff] %v2368_v47  ;;  %v2370_v45 = vld [vmem:[#allocation2 + $0x40] sm:$0xff] }
 0x107   : > { %v936_v26 = vmax.f32 %v2312_v60, %v2323_v12  ;;  %v960_v35 = vmax.f32 %v2326_v9, %v2329_v13  ;;  %2875 = vst [vmem:[#allocation17_spill] sm:$0xff] %v2370_v45 }
 0x108   : > { %v2339_v32 = vpop.f32.mrb[14].mxu0  ;;  %v2341_v34 = vpop.f32.mrb[14].mxu1 }
 0x109   : > { %2870 = vst [vmem:[#allocation12_spill] sm:$0xff] %v2341_v34  ;;  %958 = vmax.xlane.f32.xlu0 %v957_v6  ;;  %937 = vmax.xlane.f32.xlu1 %v936_v26  ;;  %v2346_v43 = vsel %vm814_vm6, -1e+30, %v2339_v32  ;;  %v2348_v49 = vpop.f32.mrb[15].mxu0  ;;  %v2351_v54 = vsel %vm830_vm7, -1e+30, %v2341_v34 }
 0x10a   : > { %2871 = vst [vmem:[#allocation13_spill] sm:$0xff] %v2351_v54  ;;  %v2353_v42 = vpop.f32.mrb[15].mxu1  ;;  %v2356_v55 = vsel %vm815_vm8, -1e+30, %v2348_v49  ;;  %v578_v6 = vld [vmem:[%s1910_s16 + $0x18] sm:$0xff]  ;;  %v580_v26 = vld [vmem:[%s1910_s16 + $0x28] sm:$0xff] }
 0x10b   : > { %2872 = vst [vmem:[#allocation14_spill] sm:$0xff] %v2353_v42  ;;  %v2359_v38 = vsel %vm831_vm9, -1e+30, %v2353_v42  ;;  %v939_v63 = vmax.f32 %v2346_v43, %v2356_v55 }
 0x10c   : > { %2873 = vst [vmem:[#allocation15_spill] sm:$0xff] %v2359_v38  ;;  %v963_v34 = vmax.f32 %v2351_v54, %v2359_v38  ;;  %v2398_v38 = vld [vmem:[#allocation2 + $0x10] sm:$0xff]  ;;  %v2434_v54 = vld [vmem:[#allocation2 + $0x20] sm:$0xff] }
 0x10d   : > { %961 = vmax.xlane.f32.xlu1 %v960_v35  ;;  %2882 = vst [vmem:[#allocation24_spill] sm:$0xff] %v2398_v38 }
 0x11e   : > { %617 = vperm.xlu1 %1660, %v578_v6  }
 0x11f   : > { %623 = vperm.xlu0 %1659, %v580_v26   ;;  %v2404_v26 = vld [vmem:[#allocation2 + $0x50] sm:$0xff] }
 0x120   : > { %2883 = vst [vmem:[#allocation25_spill] sm:$0xff] %v2404_v26 }
 0x122   : > { %620 = vperm.xlu1 %1660, %v579_v4   ;;  %v2378_v4 = vld [vmem:[#allocation2 + $0x48] sm:$0xff] }
 0x123   : > { %2878 = vst [vmem:[#allocation20_spill] sm:$0xff] %v2378_v4 }
 0x13e   : > { %940 = vmax.xlane.f32.xlu0 %v939_v63 }
 0x142   : > { %964 = vmax.xlane.f32.xlu0 %v963_v34  ;;  %v2385_v34 = vld [vmem:[#allocation2 + $0x8] sm:$0xff] }
 0x143   : > { %2879 = vst [vmem:[#allocation21_spill] sm:$0xff] %v2385_v34 }
 0x17e   : > { %v920_v42 = vpop.xlane.xlu0 %919 }
 0x17f   : > { %v944_v35 = vpop.xlane.xlu1 %943  ;;  %v2373_v31 = vmax.f32 %v2368_v47, %v920_v42 }
 0x180   : > { %v2376_v6 = vmax.f32 %v2370_v45, %v944_v35 }
 0x181   : > { %2876 = vst [vmem:[#allocation18_spill] sm:$0xff] %v2373_v31  ;;  %1318 = vst.msk [vmem:[#allocation2] sm:$0xff] %vm234_vm1, %v2373_v31  ;;  %1064 = vperm.xlu1 %1660, %v2373_v31  }
 0x182   : > { %2877 = vst [vmem:[#allocation19_spill] sm:$0xff] %v2376_v6  ;;  %1326 = vst.msk [vmem:[#allocation2 + $0x40] sm:$0xff] %vm234_vm1, %v2376_v6  ;;  %1104 = vperm.xlu0 %1659, %v2376_v6   ;;  %v947_v42 = vpop.xlane.xlu0 %946 }
 0x183   : > { %v2393_v35 = vmax.f32 %v2378_v4, %v947_v42  ;;  %v923_v63 = vpop.xlane.xlu1 %922  ;;  %v2417_v4 = vld [vmem:[#allocation2 + $0x18] sm:$0xff] }
 0x184   : > { %v2396_v47 = vmax.f32 %v2385_v34, %v923_v63  ;;  %2886 = vst [vmem:[#allocation28_spill] sm:$0xff] %v2417_v4  ;;  %v2450_v34 = vld [vmem:[#allocation2 + $0x28] sm:$0xff] }
 0x185   : > { %2880 = vst [vmem:[#allocation22_spill] sm:$0xff] %v2393_v35  ;;  %1327 = vst.msk [vmem:[#allocation2 + $0x48] sm:$0xff] %vm234_vm1, %v2393_v35 }
 0x186   : > { %2881 = vst [vmem:[#allocation23_spill] sm:$0xff] %v2396_v47  ;;  %1319 = vst.msk [vmem:[#allocation2 + $0x8] sm:$0xff] %vm234_vm1, %v2396_v47  ;;  %1069 = vperm.xlu1 %1660, %v2396_v47   ;;  %v926_v63 = vpop.xlane.xlu0 %925  ;;  %v2432_v47 = vld [vmem:[#allocation2 + $0x58] sm:$0xff] }
 0x187   : > { %v2412_v42 = vmax.f32 %v2398_v38, %v926_v63  ;;  %v950_v45 = vpop.xlane.xlu1 %949  ;;  %2888 = vst [vmem:[#allocation30_spill] sm:$0xff] %v2432_v47  ;;  %2892 = vst [vmem:[#allocation34_spill] sm:$0xff] %v2450_v34 }
 0x188   : > { %v2415_v31 = vmax.f32 %v2404_v26, %v950_v45  ;;  %v2448_v26 = vld [vmem:[#allocation2 + $0x60] sm:$0xff] }
 0x189   : > { %2884 = vst [vmem:[#allocation26_spill] sm:$0xff] %v2412_v42  ;;  %1320 = vst.msk [vmem:[#allocation2 + $0x10] sm:$0xff] %vm234_vm1, %v2412_v42  ;;  %1074 = vperm.xlu0 %1659, %v2412_v42  }
 0x18a   : > { %2885 = vst [vmem:[#allocation27_spill] sm:$0xff] %v2415_v31  ;;  %1328 = vst.msk [vmem:[#allocation2 + $0x50] sm:$0xff] %vm234_vm1, %v2415_v31  ;;  %1109 = vperm.xlu1 %1660, %v2393_v35   ;;  %v929_v45 = vpop.xlane.xlu0 %928 }
 0x18b   : > { %v2430_v63 = vmax.f32 %v2417_v4, %v929_v45  ;;  %2891 = vst [vmem:[#allocation33_spill] sm:$0xff] %v2448_v26 }
 0x18d   : > { %2887 = vst [vmem:[#allocation29_spill] sm:$0xff] %v2430_v63  ;;  %1321 = vst.msk [vmem:[#allocation2 + $0x18] sm:$0xff] %vm234_vm1, %v2430_v63  ;;  %1114 = vperm.xlu0 %1659, %v2415_v31   ;;  %v2470_v31 = vld [vmem:[#allocation2 + $0x30] sm:$0xff] }
 0x18e   : > { %1079 = vperm.xlu1 %1660, %v2430_v63   ;;  %v953_v6 = vpop.xlane.xlu0 %952  ;;  %v932_v42 = vpop.xlane.xlu1 %931  ;;  %2895 = vst [vmem:[#allocation37_spill] sm:$0xff] %v2470_v31 }
 0x18f   : > { %v2443_v35 = vmax.f32 %v2432_v47, %v953_v6  ;;  %v2446_v45 = vmax.f32 %v2434_v54, %v932_v42  ;;  %v2468_v47 = vld [vmem:[#allocation2 + $0x68] sm:$0xff] }
 0x190   : > { %2894 = vst [vmem:[#allocation36_spill] sm:$0xff] %v2468_v47 }
 0x191   : > { %2889 = vst [vmem:[#allocation31_spill] sm:$0xff] %v2443_v35  ;;  %2890 = vst [vmem:[#allocation32_spill] sm:$0xff] %v2446_v45  ;;  %1084 = vperm.xlu0 %1659, %v2446_v45  }
 0x192   : > { %1329 = vst.msk [vmem:[#allocation2 + $0x58] sm:$0xff] %vm234_vm1, %v2443_v35  ;;  %1322 = vst.msk [vmem:[#allocation2 + $0x20] sm:$0xff] %vm234_vm1, %v2446_v45  ;;  %1119 = vperm.xlu1 %1660, %v2443_v35   ;;  %v956_v6 = vpop.xlane.xlu1 %955  ;;  %v935_v42 = vpop.xlane.xlu0 %934 }
 0x193   : > { %v2463_v4 = vmax.f32 %v2448_v26, %v956_v6  ;;  %v2466_v38 = vmax.f32 %v2450_v34, %v935_v42  ;;  %v2488_v26 = vld [vmem:[#allocation2 + $0x70] sm:$0xff] }
 0x194   : > { %2898 = vst [vmem:[#allocation40_spill] sm:$0xff] %v2488_v26  ;;  %v2509_v34 = vld [vmem:[%s1910_s16 + $0x30] sm:$0xff] }
 0x195   : > { %2893 = vst [vmem:[#allocation35_spill] sm:$0xff] %v2466_v38  ;;  %1330 = vst.msk [vmem:[#allocation2 + $0x60] sm:$0xff] %vm234_vm1, %v2463_v4  ;;  %1124 = vperm.xlu0 %1659, %v2463_v4  }
 0x196   : > { %1323 = vst.msk [vmem:[#allocation2 + $0x28] sm:$0xff] %vm234_vm1, %v2466_v38  ;;  %1089 = vperm.xlu1 %1660, %v2466_v38   ;;  %v959_v6 = vpop.xlane.xlu0 %958  ;;  %v938_v42 = vpop.xlane.xlu1 %937  ;;  %2900 = vst [vmem:[#allocation42_spill] sm:$0xff] %v2509_v34 }
 0x197   : > { %v2483_v45 = vmax.f32 %v2468_v47, %v959_v6  ;;  %v2486_v63 = vmax.f32 %v2470_v31, %v938_v42 }
 0x199   : > { %2896 = vst [vmem:[#allocation38_spill] sm:$0xff] %v2483_v45  ;;  %2897 = vst [vmem:[#allocation39_spill] sm:$0xff] %v2486_v63  ;;  %1094 = vperm.xlu0 %1659, %v2486_v63  }
 0x19a   : > { %1331 = vst.msk [vmem:[#allocation2 + $0x68] sm:$0xff] %vm234_vm1, %v2483_v45  ;;  %1324 = vst.msk [vmem:[#allocation2 + $0x30] sm:$0xff] %vm234_vm1, %v2486_v63  ;;  %1129 = vperm.xlu1 %1660, %v2483_v45   ;;  %v962_v6 = vpop.xlane.xlu1 %961 }
 0x19b   : > { %v2501_v42 = vmax.f32 %v2488_v26, %v962_v6 }
 0x19d   : > { %2899 = vst [vmem:[#allocation41_spill] sm:$0xff] %v2501_v42  ;;  %1332 = vst.msk [vmem:[#allocation2 + $0x70] sm:$0xff] %vm234_vm1, %v2501_v42  ;;  %1134 = vperm.xlu0 %1659, %v2501_v42  }
 0x19e   : > { %v624_v38 = vpop.permute.xlu0 %623  ;;  %v618_v47 = vpop.permute.xlu1 %617 }
 0x19f   : > { %vm665_vm10 = vcmp.eq.s32.totalorder %v2051_v58, %v624_v38  ;;  %vm666_vm11 = vcmp.eq.s32.totalorder %v2060_v1, %v624_v38  ;;  %vm661_vm12 = vcmp.eq.s32.totalorder %v2051_v58, %v618_v47  ;;  %vm662_vm13 = vcmp.eq.s32.totalorder %v2060_v1, %v618_v47  ;;  %v2521_v38 = vld [vmem:[%s1910_s16 + $0x40] sm:$0xff]  ;;  %v2529_v47 = vld [vmem:[%s1910_s16 + $0x50] sm:$0xff] }
 0x1a0   : > { %v693_v6 = vsel %vm661_vm12, %v2201_v62, 0.0  ;;  %v697_v35 = vsel %vm665_vm10, %v2277_v36, 0.0  ;;  %v698_v45 = vsel %vm666_vm11, %v2284_v40, 0.0  ;;  %v694_v42 = vsel %vm662_vm13, %v2214_v3, 0.0  ;;  %2901 = vst [vmem:[#allocation43_spill] sm:$0xff] %v2521_v38  ;;  %2902 = vst [vmem:[#allocation44_spill] sm:$0xff] %v2529_v47 }
 0x1a1   : > { %626 = vperm.xlu0 %1659, %v2509_v34   ;;  %v734_v26 = vadd.f32 %v698_v45, %v697_v35  ;;  %v728_v31 = vadd.f32 %v694_v42, %v693_v6  ;;  %v2533_v3 = vld [vmem:[%s1910_s16 + $0x60] sm:$0xff]  ;;  %v2537_v35 = vld [vmem:[%s1910_s16 + $0x70] sm:$0xff]  ;;  %v2545_v45 = vld [vmem:[#allocation2 + $0x78] sm:$0xff] }
 0x1a2   : > { %v621_v63 = vpop.permute.xlu1 %620  ;;  %2903 = vst [vmem:[#allocation45_spill] sm:$0xff] %v2533_v3  ;;  %2904 = vst [vmem:[#allocation46_spill] sm:$0xff] %v2537_v35  ;;  %v584_v42 = vld [vmem:[%s1910_s16 + $0x48] sm:$0xff] }
 0x1a3   : > { %vm663_vm14 = vcmp.eq.s32.totalorder %v2051_v58, %v621_v63  ;;  %vm664_vm15 = vcmp.eq.s32.totalorder %v2060_v1, %v621_v63  ;;  %v2540_v63 = vld [vmem:[#allocation2 + $0x38] sm:$0xff]  ;;  %2907 = vst [vmem:[#allocation49_spill] sm:$0xff] %v2545_v45 }
 0x1a4   : > { %v695_v62 = vsel %vm663_vm14, %v2243_v16, 0.0  ;;  %v696_v36 = vsel %vm664_vm15, %v2252_v22, 0.0  ;;  %2905 = vst [vmem:[#allocation47_spill] sm:$0xff] %v2540_v63 }
 0x1a5   : > { %632 = vperm.xlu0 %1659, %v2521_v38   ;;  %v731_v40 = vadd.f32 %v696_v36, %v695_v62 }
 0x1a9   : > { %638 = vperm.xlu0 %1659, %v2529_v47  }
 0x1ad   : > { %644 = vperm.xlu0 %1659, %v2533_v3  }
 0x1b1   : > { %650 = vperm.xlu0 %1659, %v2537_v35  }
 0x1cb   : > { %v941_v16 = vpop.xlane.xlu0 %940 }
 0x1cc   : > { %v2543_v22 = vmax.f32 %v2540_v63, %v941_v16  ;;  %v582_v16 = vld [vmem:[%s1910_s16 + $0x38] sm:$0xff] }
 0x1cd   : > { %v590_v63 = vld [vmem:[%s1910_s16 + $0x78] sm:$0xff] }
 0x1ce   : > { %2906 = vst [vmem:[#allocation48_spill] sm:$0xff] %v2543_v22  ;;  %1325 = vst.msk [vmem:[#allocation2 + $0x38] sm:$0xff] %vm234_vm1, %v2543_v22  ;;  %1099 = vperm.xlu1 %1660, %v2543_v22   ;;  %v586_v22 = vld [vmem:[%s1910_s16 + $0x58] sm:$0xff] }
 0x1cf   : > { %v965_v6 = vpop.xlane.xlu0 %964 }
 0x1d0   : > { %v2553_v62 = vmax.f32 %v2545_v45, %v965_v6  ;;  %723 = vadd.xlane.f32.xlu0 %v2167_v44  ;;  %v588_v6 = vld [vmem:[%s1910_s16 + $0x68] sm:$0xff] }
 0x1d2   : > { %2908 = vst [vmem:[#allocation50_spill] sm:$0xff] %v2553_v62  ;;  %1333 = vst.msk [vmem:[#allocation2 + $0x78] sm:$0xff] %vm234_vm1, %v2553_v62  ;;  %1139 = vperm.xlu1 %1660, %v2553_v62  }
 0x1d4   : > { %729 = vadd.xlane.f32.xlu0 %v728_v31 }
 0x1d6   : > { %629 = vperm.xlu1 %1660, %v582_v16  }
 0x1d8   : > { %735 = vadd.xlane.f32.xlu0 %v734_v26 }
 0x1da   : > { %635 = vperm.xlu1 %1660, %v584_v42  }
 0x1de   : > { %641 = vperm.xlu1 %1660, %v586_v22  }
 0x1e2   : > { %647 = vperm.xlu1 %1660, %v588_v6  }
 0x1e6   : > { %653 = vperm.xlu1 %1660, %v590_v63  }
 0x200   : > { %v2569_v36 = vpop.permute.xlu1 %1064 }
 0x201   : > { %v1105_v44 = vpop.permute.xlu0 %1104 }
 0x202   : > { %v1158_v26 = vsub.f32 %v2097_v15, %v1105_v44  ;;  %v1159_v42 = vsub.f32 %v2115_v20, %v1105_v44 }
 0x204   : > { %v1206_v6 = vmul.f32 1.442695, %v1158_v26  ;;  %v1208_v45 = vmul.f32 1.442695, %v1159_v42 }
 0x205   : > { %v1070_v22 = vpop.permute.xlu1 %1069 }
 0x206   : > { %v1144_v63 = vsub.f32 %v2133_v29, %v1070_v22  ;;  %v1145_v3 = vsub.f32 %v2156_v37, %v1070_v22  ;;  %1661 = vpow2.f32 %v1206_v6 }
 0x207   : > { %1663 = vpow2.f32 %v1208_v45 }
 0x208   : > { %v2566_v35 = vpop.permute.xlu0 %1074  ;;  %v1178_v47 = vmul.f32 1.442695, %v1144_v63 }
 0x20a   : > { %720 = vadd.xlane.f32.xlu1 %v2121_v23  ;;  %1665 = vpow2.f32 %v1178_v47 }
 0x20c   : > { %v1115_v62 = vpop.permute.xlu0 %1114 }
 0x20d   : > { %v1162_v23 = vsub.f32 %v2178_v48, %v1115_v62  ;;  %v1163_v15 = vsub.f32 %v2194_v57, %v1115_v62 }
 0x20e   : > { %726 = vadd.xlane.f32.xlu1 %v2199_v61  ;;  %v1180_v61 = vmul.f32 1.442695, %v1145_v3 }
 0x20f   : > { %v1214_v38 = vmul.f32 1.442695, %v1162_v23  ;;  %v1216_v29 = vmul.f32 1.442695, %v1163_v15 }
 0x210   : > { %v1085_v31 = vpop.permute.xlu0 %1084  ;;  %1667 = vpow2.f32 %v1180_v61 }
 0x211   : > { %v1151_v44 = vsub.f32 %v2263_v50, %v1085_v31  ;;  %1669 = vpow2.f32 %v1214_v38  ;;  %v1662_v50 = vpop.eup %1661 }
 0x212   : > { %732 = vadd.xlane.f32.xlu1 %v731_v40  ;;  %v1150_v40 = vsub.f32 %v2250_v21, %v1085_v31  ;;  %1671 = vpow2.f32 %v1216_v29  ;;  %v1664_v45 = vpop.eup %1663 }
 0x213   : > { %v1192_v42 = vmul.f32 1.442695, %v1151_v44 }
 0x214   : > { %v1125_v16 = vpop.permute.xlu0 %1124  ;;  %v1190_v26 = vmul.f32 1.442695, %v1150_v40  ;;  %v1666_v22 = vpop.eup %1665 }
 0x215   : > { %v1166_v37 = vsub.f32 %v2266_v27, %v1125_v16  ;;  %v1167_v57 = vsub.f32 %v2269_v28, %v1125_v16  ;;  %v1262_v16 = vadd.f32 %v1664_v45, %v1662_v50 }
 0x216   : > { %1673 = vpow2.f32 %v1190_v26 }
 0x217   : > { %v1222_v38 = vmul.f32 1.442695, %v1166_v37  ;;  %1675 = vpow2.f32 %v1192_v42  ;;  %v1224_v28 = vmul.f32 1.442695, %v1167_v57 }
 0x218   : > { %v1095_v34 = vpop.permute.xlu0 %1094 }
 0x219   : > { %v1154_v27 = vsub.f32 %v2312_v60, %v1095_v34  ;;  %v1155_v31 = vsub.f32 %v2323_v12, %v1095_v34  ;;  %1677 = vpow2.f32 %v1222_v38 }
 0x21a   : > { %v1668_v63 = vpop.eup %1667  ;;  %1679 = vpow2.f32 %v1224_v28 }
 0x21b   : > { %v1198_v60 = vmul.f32 1.442695, %v1154_v27  ;;  %v1200_v61 = vmul.f32 1.442695, %v1155_v31  ;;  %v1670_v34 = vpop.eup %1669  ;;  %v1241_v40 = vadd.f32 %v1668_v63, %v1666_v22 }
 0x21c   : > { %v1135_v20 = vpop.permute.xlu0 %1134  ;;  %v1672_v29 = vpop.eup %1671 }
 0x21d   : > { %v1170_v12 = vsub.f32 %v2326_v9, %v1135_v20  ;;  %1681 = vpow2.f32 %v1198_v60 }
 0x21e   : > { %1683 = vpow2.f32 %v1200_v61 }
 0x220   : > { %v627_v48 = vpop.permute.xlu0 %626 }
 0x221   : > { %vm667_vm0 = vcmp.eq.s32.totalorder %v2051_v58, %v627_v48  ;;  %vm668_vm2 = vcmp.eq.s32.totalorder %v2060_v1, %v627_v48  ;;  %v1230_v48 = vmul.f32 1.442695, %v1170_v12 }
 0x222   : > { %v699_v47 = vsel %vm667_vm0, %v2307_v56, 0.0  ;;  %v700_v21 = vsel %vm668_vm2, %v2314_v0, 0.0 }
 0x223   : > { %v737_v3 = vadd.f32 %v700_v21, %v699_v47  ;;  %v1110_v47 = vpop.permute.xlu1 %1109  ;;  %1685 = vpow2.f32 %v1230_v48 }
 0x224   : > { %v633_v62 = vpop.permute.xlu0 %632  ;;  %v1160_v61 = vsub.f32 %v2138_v30, %v1110_v47 }
 0x225   : > { %vm671_vm3 = vcmp.eq.s32.totalorder %v2051_v58, %v633_v62  ;;  %vm672_vm4 = vcmp.eq.s32.totalorder %v2060_v1, %v633_v62  ;;  %738 = vadd.xlane.f32.xlu1 %v737_v3 }
 0x226   : > { %v703_v56 = vsel %vm671_vm3, %v2083_v11, 0.0  ;;  %v704_v0 = vsel %vm672_vm4, %v2107_v19, 0.0  ;;  %v1171_v11 = vsub.f32 %v2329_v13, %v1135_v20  ;;  %v1268_v20 = vadd.f32 %v1672_v29, %v1670_v34 }
 0x227   : > { %v743_v6 = vadd.f32 %v704_v0, %v703_v56  ;;  %v1080_v27 = vpop.permute.xlu1 %1079  ;;  %v1161_v34 = vsub.f32 %v2146_v33, %v1110_v47 }
 0x228   : > { %v639_v23 = vpop.permute.xlu0 %638  ;;  %v1232_v9 = vmul.f32 1.442695, %v1171_v11  ;;  %v1149_v33 = vsub.f32 %v2225_v7, %v1080_v27 }
 0x229   : > { %vm675_vm5 = vcmp.eq.s32.totalorder %v2051_v58, %v639_v23  ;;  %vm676_vm6 = vcmp.eq.s32.totalorder %v2060_v1, %v639_v23  ;;  %1263 = vadd.xlane.f32.xlu1 %v1262_v16 }
 0x22a   : > { %v707_v19 = vsel %vm675_vm5, %v2163_v41, 0.0  ;;  %v708_v15 = vsel %vm676_vm6, %v2186_v52, 0.0  ;;  %v1674_v41 = vpop.eup %1673  ;;  %1687 = vpow2.f32 %v1232_v9 }
 0x22b   : > { %v749_v44 = vadd.f32 %v708_v15, %v707_v19  ;;  %v1676_v42 = vpop.eup %1675  ;;  %v1120_v22 = vpop.permute.xlu1 %1119  ;;  %v1212_v19 = vmul.f32 1.442695, %v1161_v34 }
 0x22c   : > { %v645_v37 = vpop.permute.xlu0 %644  ;;  %v1678_v21 = vpop.eup %1677  ;;  %v1250_v3 = vadd.f32 %v1676_v42, %v1674_v41  ;;  %v1164_v29 = vsub.f32 %v2230_v8, %v1120_v22 }
 0x22d   : > { %vm679_vm7 = vcmp.eq.s32.totalorder %v2051_v58, %v645_v37  ;;  %vm680_vm8 = vcmp.eq.s32.totalorder %v2060_v1, %v645_v37  ;;  %1242 = vadd.xlane.f32.xlu1 %v1241_v40  ;;  %v1680_v45 = vpop.eup %1679  ;;  %v1188_v37 = vmul.f32 1.442695, %v1149_v33 }
 0x22e   : > { %v711_v26 = vsel %vm679_vm7, %v2245_v17, 0.0  ;;  %v712_v13 = vsel %vm680_vm8, %v2255_v24, 0.0  ;;  %v1682_v38 = vpop.eup %1681  ;;  %v1274_v62 = vadd.f32 %v1680_v45, %v1678_v21 }
 0x22f   : > { %v755_v52 = vadd.f32 %v712_v13, %v711_v26  ;;  %v1684_v31 = vpop.eup %1683  ;;  %v2606_v63 = vpop.permute.xlu1 %1089  ;;  %v1218_v26 = vmul.f32 1.442695, %v1164_v29 }
 0x230   : > { %v651_v57 = vpop.permute.xlu0 %650  ;;  %v1686_v28 = vpop.eup %1685  ;;  %v1256_v56 = vadd.f32 %v1684_v31, %v1682_v38  ;;  %v1152_v13 = vsub.f32 %v2282_v39, %v2606_v63 }
 0x231   : > { %vm683_vm9 = vcmp.eq.s32.totalorder %v2051_v58, %v651_v57  ;;  %vm684_vm10 = vcmp.eq.s32.totalorder %v2060_v1, %v651_v57  ;;  %1269 = vadd.xlane.f32.xlu1 %v1268_v20  ;;  %v2909_v20 = vld [vmem:[#allocation5_spill] sm:$0xff]  ;;  %v2910_v57 = vld [vmem:[#allocation10_spill] sm:$0xff] }
 0x232   : > { %v715_v50 = vsel %vm683_vm9, %v2309_v59, 0.0  ;;  %v716_v17 = vsel %vm684_vm10, %v2316_v5, 0.0  ;;  %v1142_v59 = vsub.f32 %v2092_v14, %v2569_v36  ;;  %v1143_v5 = vsub.f32 %v2105_v18, %v2569_v36 }
 0x233   : > { %v761_v24 = vadd.f32 %v716_v17, %v715_v50  ;;  %v2612_v60 = vpop.permute.xlu1 %1129  ;;  %v1146_v14 = vsub.f32 %v2172_v46, %v2566_v35  ;;  %v1147_v18 = vsub.f32 %v2184_v51, %v2566_v35  ;;  %v1148_v36 = vsub.f32 %v2212_v2, %v1080_v27  ;;  %v2911_v17 = vld [vmem:[#allocation11_spill] sm:$0xff]  ;;  %v594_v27 = vld [vmem:[#allocation4 + $0x18] sm:$0xff] }
 0x234   : > { %v1688_v0 = vpop.eup %1687  ;;  %v1174_v23 = vmul.f32 1.442695, %v1142_v59  ;;  %v1176_v12 = vmul.f32 1.442695, %v1143_v5  ;;  %v1165_v51 = vsub.f32 %v2235_v10, %v1120_v22  ;;  %v1168_v47 = vsub.f32 %v2910_v57, %v2612_v60 }
 0x235   : > { %1251 = vadd.xlane.f32.xlu1 %v1250_v3  ;;  %v1280_v16 = vadd.f32 %v1688_v0, %v1686_v28  ;;  %v1182_v30 = vmul.f32 1.442695, %v1146_v14  ;;  %v1184_v40 = vmul.f32 1.442695, %v1147_v18  ;;  %v1169_v3 = vsub.f32 %v2911_v17, %v2612_v60  ;;  %v2913_v28 = vld [vmem:[#allocation7_spill] sm:$0xff]  ;;  %v596_v14 = vld [vmem:[#allocation4 + $0x28] sm:$0xff] }
 0x236   : > { %1689 = vpow2.f32 %v1174_v23  ;;  %v1220_v10 = vmul.f32 1.442695, %v1165_v51  ;;  %v1226_v22 = vmul.f32 1.442695, %v1168_v47 }
 0x237   : > { %1691 = vpow2.f32 %v1176_v12  ;;  %v1228_v5 = vmul.f32 1.442695, %v1169_v3 }
 0x239   : > { %1275 = vadd.xlane.f32.xlu1 %v1274_v62  ;;  %v2912_v62 = vld [vmem:[#allocation6_spill] sm:$0xff] }
 0x23d   : > { %1257 = vadd.xlane.f32.xlu1 %v1256_v56 }
 0x240   : > { %v1690_v7 = vpop.eup %1689 }
 0x241   : > { %1281 = vadd.xlane.f32.xlu1 %v1280_v16  ;;  %v1692_v9 = vpop.eup %1691 }
 0x242   : > { %v1238_v21 = vadd.f32 %v1692_v9, %v1690_v7 }
 0x245   : > { %744 = vadd.xlane.f32.xlu1 %v743_v6  ;;  %v1210_v6 = vmul.f32 1.442695, %v1160_v61 }
 0x247   : > { %1693 = vpow2.f32 %v1210_v6 }
 0x248   : > { %1695 = vpow2.f32 %v1212_v19  ;;  %v2914_v19 = vld [vmem:[#allocation8_spill] sm:$0xff] }
 0x249   : > { %750 = vadd.xlane.f32.xlu1 %v749_v44  ;;  %v1186_v44 = vmul.f32 1.442695, %v1148_v36  ;;  %1697 = vpow2.f32 %v1182_v30  ;;  %v2915_v36 = vld [vmem:[#allocation9_spill] sm:$0xff] }
 0x24a   : > { %1699 = vpow2.f32 %v1184_v40 }
 0x24b   : > { %1701 = vpow2.f32 %v1186_v44 }
 0x24c   : > { %1703 = vpow2.f32 %v1188_v37  ;;  %v2916_v37 = vld [vmem:[#allocation13_spill] sm:$0xff] }
 0x24d   : > { %v2616_v11 = vpop.permute.xlu1 %1099  ;;  %756 = vadd.xlane.f32.xlu1 %v755_v52  ;;  %1705 = vpow2.f32 %v1218_v26  ;;  %v2919_v26 = vld [vmem:[#allocation14_spill] sm:$0xff] }
 0x24e   : > { %1707 = vpow2.f32 %v1220_v10  ;;  %v1156_v60 = vsub.f32 %v2346_v43, %v2616_v11  ;;  %v1157_v6 = vsub.f32 %v2356_v55, %v2616_v11 }
 0x250   : > { %v1202_v44 = vmul.f32 1.442695, %v1156_v60 }
 0x251   : > { %v2623_v15 = vpop.permute.xlu1 %1139  ;;  %762 = vadd.xlane.f32.xlu1 %v761_v24  ;;  %v1694_v42 = vpop.eup %1693 }
 0x252   : > { %v1696_v50 = vpop.eup %1695  ;;  %v1172_v51 = vsub.f32 %v2916_v37, %v2623_v15 }
 0x253   : > { %v1698_v0 = vpop.eup %1697  ;;  %v1265_v16 = vadd.f32 %v1696_v50, %v1694_v42 }
 0x254   : > { %v1700_v59 = vpop.eup %1699 }
 0x255   : > { %v630_v46 = vpop.permute.xlu1 %629  ;;  %v1702_v34 = vpop.eup %1701  ;;  %v1244_v33 = vadd.f32 %v1700_v59, %v1698_v0  ;;  %v2921_v0 = vld [vmem:[#allocation19_spill] sm:$0xff] }
 0x256   : > { %vm669_vm11 = vcmp.eq.s32.totalorder %v2051_v58, %v630_v46  ;;  %vm670_vm12 = vcmp.eq.s32.totalorder %v2060_v1, %v630_v46  ;;  %v1704_v43 = vpop.eup %1703  ;;  %v2924_v59 = vld [vmem:[#allocation23_spill] sm:$0xff] }
 0x257   : > { %v701_v2 = vsel %vm669_vm11, %v2339_v32, 0.0  ;;  %v702_v35 = vsel %vm670_vm12, %v2348_v49, 0.0  ;;  %v1153_v32 = vsub.f32 %v2293_v53, %v2606_v63  ;;  %v592_v49 = vld [vmem:[#allocation4 + $0x8] sm:$0xff]  ;;  %v1194_v53 = vmul.f32 1.442695, %v1152_v13  ;;  %v1706_v11 = vpop.eup %1705 }
 0x258   : > { %v740_v48 = vadd.f32 %v702_v35, %v701_v2  ;;  %v1204_v2 = vmul.f32 1.442695, %v1157_v6  ;;  %v2917_v35 = vld [vmem:[#allocation15_spill] sm:$0xff]  ;;  %v1247_v13 = vadd.f32 %v1704_v43, %v1702_v34  ;;  %v2929_v6 = vld [vmem:[#allocation32_spill] sm:$0xff]  ;;  %v1038_v43 = vld [vmem:[#allocation3 + $0x40] sm:$0xff] }
 0x259   : > { %v636_v8 = vpop.permute.xlu1 %635  ;;  %v1196_v38 = vmul.f32 1.442695, %v1153_v32  ;;  %1709 = vpow2.f32 %v1194_v53  ;;  %v1173_v7 = vsub.f32 %v2917_v35, %v2623_v15  ;;  %v1708_v32 = vpop.eup %1707 }
 0x25a   : > { %vm673_vm13 = vcmp.eq.s32.totalorder %v2051_v58, %v636_v8  ;;  %vm674_vm14 = vcmp.eq.s32.totalorder %v2060_v1, %v636_v8  ;;  %741 = vadd.xlane.f32.xlu0 %v740_v48  ;;  %v2918_v48 = vld [vmem:[#allocation12_spill] sm:$0xff] }
 0x25b   : > { %v705_v41 = vsel %vm673_vm13, %v2124_v25, 0.0  ;;  %v706_v52 = vsel %vm674_vm14, %v2909_v20, 0.0  ;;  %1711 = vpow2.f32 %v1196_v38  ;;  %v593_v38 = vld [vmem:[#allocation4 + $0x10] sm:$0xff] }
 0x25c   : > { %v2642_v39 = vadd.f32 %v706_v52, %v705_v41  ;;  %1713 = vpow2.f32 %v1226_v22  ;;  %v1271_v41 = vadd.f32 %v1708_v32, %v1706_v11 }
 0x25d   : > { %v642_v24 = vpop.permute.xlu1 %641  ;;  %v724_v45 = vpop.xlane.xlu0 %723  ;;  %1715 = vpow2.f32 %v1228_v5 }
 0x25e   : > { %vm677_vm15 = vcmp.eq.s32.totalorder %v2051_v58, %v642_v24  ;;  %vm678_vm0 = vcmp.eq.s32.totalorder %v2060_v1, %v642_v24  ;;  %v768_v25 = vadd.f32 %v724_v45, %v592_v49  ;;  %1239 = vadd.xlane.f32.xlu0 %v1238_v21  ;;  %1717 = vpow2.f32 %v1202_v44  ;;  %v591_v45 = vld [vmem:[#allocation4] sm:$0xff] }
 0x25f   : > { %v709_v31 = vsel %vm677_vm15, %v2912_v62, 0.0  ;;  %v710_v56 = vsel %vm678_vm0, %v2913_v28, 0.0  ;;  %1719 = vpow2.f32 %v1204_v2  ;;  %v2934_v2 = vld [vmem:[#allocation39_spill] sm:$0xff] }
 0x260   : > { %785 = vst.msk [vmem:[#allocation4 + $0x8] sm:$0xff] %vm234_vm1, %v768_v25  ;;  %v2651_v63 = vadd.f32 %v710_v56, %v709_v31  ;;  %v595_v31 = vld [vmem:[#allocation4 + $0x20] sm:$0xff] }
 0x261   : > { %v648_v23 = vpop.permute.xlu1 %647  ;;  %v730_v61 = vpop.xlane.xlu0 %729 }
 0x262   : > { %vm681_vm2 = vcmp.eq.s32.totalorder %v2051_v58, %v648_v23  ;;  %vm682_vm3 = vcmp.eq.s32.totalorder %v2060_v1, %v648_v23  ;;  %v770_v12 = vadd.f32 %v730_v61, %v594_v27  ;;  %1266 = vadd.xlane.f32.xlu0 %v1265_v16  ;;  %v2926_v23 = vld [vmem:[#allocation25_spill] sm:$0xff]  ;;  %v2927_v61 = vld [vmem:[#allocation27_spill] sm:$0xff] }
 0x263   : > { %v713_v18 = vsel %vm681_vm2, %v2914_v19, 0.0  ;;  %v714_v30 = vsel %vm682_vm3, %v2915_v36, 0.0  ;;  %v1710_v49 = vpop.eup %1709 }
 0x264   : > { %787 = vst.msk [vmem:[#allocation4 + $0x18] sm:$0xff] %vm234_vm1, %v770_v12  ;;  %v758_v40 = vadd.f32 %v714_v30, %v713_v18  ;;  %v2928_v12 = vsub.f32 %v2926_v23, %v2927_v61  ;;  %v597_v18 = vld [vmem:[#allocation4 + $0x30] sm:$0xff]  ;;  %v1354_v23 = vld [vmem:[#allocation2 + $0x8] sm:$0xff] }
 0x265   : > { %v654_v29 = vpop.permute.xlu1 %653  ;;  %v736_v46 = vpop.xlane.xlu0 %735 }
 0x266   : > { %vm685_vm4 = vcmp.eq.s32.totalorder %v2051_v58, %v654_v29  ;;  %vm686_vm5 = vcmp.eq.s32.totalorder %v2060_v1, %v654_v29  ;;  %v772_v55 = vadd.f32 %v736_v46, %v596_v14  ;;  %1245 = vadd.xlane.f32.xlu0 %v1244_v33  ;;  %v1234_v58 = vmul.f32 1.442695, %v1172_v51  ;;  %v1712_v20 = vpop.eup %1711 }
 0x267   : > { %v717_v9 = vsel %vm685_vm4, %v2918_v48, 0.0  ;;  %v718_v8 = vsel %vm686_vm5, %v2919_v26, 0.0  ;;  %v1236_v1 = vmul.f32 1.442695, %v1173_v7  ;;  %v1714_v52 = vpop.eup %1713  ;;  %v1253_v42 = vadd.f32 %v1712_v20, %v1710_v49  ;;  %v1034_v20 = vld [vmem:[#allocation3 + $0x20] sm:$0xff] }
 0x268   : > { %789 = vst.msk [vmem:[#allocation4 + $0x28] sm:$0xff] %vm234_vm1, %v772_v55  ;;  %v764_v10 = vadd.f32 %v718_v8, %v717_v9  ;;  %1721 = vpow2.f32 %v1234_v58  ;;  %v1716_v15 = vpop.eup %1715  ;;  %v1018_v34 = vmul.f32 1.442695, %v2928_v12  ;;  %v2930_v14 = vsub.f32 %v2434_v54, %v2929_v6  ;;  %v1031_v55 = vld [vmem:[#allocation3 + $0x8] sm:$0xff]  ;;  %v2933_v54 = vld [vmem:[#allocation37_spill] sm:$0xff]  ;;  %v1040_v8 = vld [vmem:[#allocation3 + $0x50] sm:$0xff] }
 0x269   : > { %1723 = vpow2.f32 %v1236_v1  ;;  %v1718_v57 = vpop.eup %1717  ;;  %v1277_v47 = vadd.f32 %v1716_v15, %v1714_v52  ;;  %v2935_v35 = vsub.f32 %v2933_v54, %v2934_v2  ;;  %v1434_v6 = vld [vmem:[#allocation4 + $0x8] sm:$0xff] }
 0x26a   : > { %1248 = vadd.xlane.f32.xlu0 %v1247_v13  ;;  %v1720_v21 = vpop.eup %1719  ;;  %v1006_v19 = vmul.f32 1.442695, %v2930_v14  ;;  %v2936_v13 = vld [vmem:[#allocation40_spill] sm:$0xff]  ;;  %v2940_v54 = vld [vmem:[#allocation18_spill] sm:$0xff] }
 0x26b   : > { %v1259_v17 = vadd.f32 %v1720_v21, %v1718_v57  ;;  %v1010_v7 = vmul.f32 1.442695, %v2935_v35 }
 0x26e   : > { %1272 = vadd.xlane.f32.xlu0 %v1271_v41 }
 0x272   : > { %1254 = vadd.xlane.f32.xlu0 %v1253_v42  ;;  %v1722_v50 = vpop.eup %1721 }
 0x273   : > { %v1724_v3 = vpop.eup %1723 }
 0x274   : > { %v1283_v24 = vadd.f32 %v1724_v3, %v1722_v50 }
 0x276   : > { %1278 = vadd.xlane.f32.xlu0 %v1277_v47  ;;  %v1042_v47 = vld [vmem:[#allocation3 + $0x60] sm:$0xff] }
 0x27a   : > { %1260 = vadd.xlane.f32.xlu0 %v1259_v17 }
 0x27e   : > { %1284 = vadd.xlane.f32.xlu0 %v1283_v24 }
 0x282   : > { %747 = vadd.xlane.f32.xlu0 %v2642_v39  ;;  %v2920_v39 = vld [vmem:[#allocation17_spill] sm:$0xff] }
 0x283   : > { %v2922_v22 = vsub.f32 %v2920_v39, %v2921_v0 }
 0x285   : > { %v1014_v16 = vmul.f32 1.442695, %v2922_v22 }
 0x286   : > { %753 = vadd.xlane.f32.xlu0 %v2651_v63  ;;  %v2923_v63 = vld [vmem:[#allocation21_spill] sm:$0xff] }
 0x287   : > { %1725 = vpow2.f32 %v1014_v16  ;;  %v2925_v5 = vsub.f32 %v2923_v63, %v2924_v59 }
 0x289   : > { %v1000_v60 = vmul.f32 1.442695, %v2925_v5 }
 0x28a   : > { %759 = vadd.xlane.f32.xlu0 %v758_v40  ;;  %v2931_v40 = vld [vmem:[#allocation33_spill] sm:$0xff] }
 0x28b   : > { %1727 = vpow2.f32 %v1000_v60  ;;  %v2932_v44 = vsub.f32 %v2931_v40, %v2463_v4  ;;  %v599_v60 = vld [vmem:[#allocation4 + $0x40] sm:$0xff] }
 0x28c   : > { %1729 = vpow2.f32 %v1018_v34  ;;  %v1789_v34 = vld [vmem:[%s1910_s16 + $0x8] sm:$0xff] }
 0x28d   : > { %1731 = vpow2.f32 %v1006_v19  ;;  %v1022_v29 = vmul.f32 1.442695, %v2932_v44  ;;  %vm1338_vm6 = vcmp.lt.s32.totalorder %v1789_v34, 256 }
 0x28e   : > { %765 = vadd.xlane.f32.xlu0 %v764_v10  ;;  %v2937_v10 = vld [vmem:[#allocation41_spill] sm:$0xff] }
 0x28f   : > { %1733 = vpow2.f32 %v1022_v29  ;;  %v2938_v32 = vsub.f32 %v2936_v13, %v2937_v10 }
 0x290   : > { %1735 = vpow2.f32 %v1010_v7  ;;  %v1357_v7 = vld [vmem:[#allocation2 + $0x20] sm:$0xff] }
 0x291   : > { %v1726_v36 = vpop.eup %1725  ;;  %v1026_v58 = vmul.f32 1.442695, %v2938_v32 }
 0x292   : > { %v1054_v46 = vmul.f32 %v1726_v36, %v1038_v43 }
 0x293   : > { %1737 = vpow2.f32 %v1026_v58 }
 0x295   : > { %v1728_v37 = vpop.eup %1727 }
 0x296   : > { %v1047_v48 = vmul.f32 %v1728_v37, %v1031_v55  ;;  %v1730_v9 = vpop.eup %1729  ;;  %v603_v55 = vld [vmem:[#allocation4 + $0x60] sm:$0xff] }
 0x297   : > { %v721_v53 = vpop.xlane.xlu1 %720  ;;  %v1056_v1 = vmul.f32 %v1730_v9, %v1040_v8  ;;  %v1732_v49 = vpop.eup %1731  ;;  %v1790_v8 = vld [vmem:[%s1910_s16 + $0x20] sm:$0xff] }
 0x298   : > { %v767_v25 = vadd.f32 %v721_v53, %v591_v45  ;;  %v1050_v15 = vmul.f32 %v1732_v49, %v1034_v20  ;;  %v1036_v45 = vld [vmem:[#allocation3 + $0x30] sm:$0xff]  ;;  %vm1341_vm7 = vcmp.lt.s32.totalorder %v1790_v8, 256 }
 0x299   : > { %v1734_v42 = vpop.eup %1733  ;;  %v605_v20 = vld [vmem:[#allocation4 + $0x70] sm:$0xff] }
 0x29a   : > { %784 = vst.msk [vmem:[#allocation4] sm:$0xff] %vm234_vm1, %v767_v25  ;;  %v1058_v17 = vmul.f32 %v1734_v42, %v1042_v47  ;;  %v1736_v3 = vpop.eup %1735 }
 0x29b   : > { %v727_v27 = vpop.xlane.xlu1 %726 }
 0x29c   : > { %v769_v62 = vadd.f32 %v727_v27, %v593_v38  ;;  %v1052_v38 = vmul.f32 %v1736_v3, %v1036_v45 }
 0x29d   : > { %v1738_v27 = vpop.eup %1737 }
 0x29e   : > { %786 = vst.msk [vmem:[#allocation4 + $0x10] sm:$0xff] %vm234_vm1, %v769_v62 }
 0x29f   : > { %v733_v28 = vpop.xlane.xlu1 %732 }
 0x2a0   : > { %v771_v56 = vadd.f32 %v733_v28, %v595_v31  ;;  %v1044_v31 = vld [vmem:[#allocation3 + $0x70] sm:$0xff] }
 0x2a1   : > { %v1060_v0 = vmul.f32 %v1738_v27, %v1044_v31  ;;  %v2947_v31 = vld [vmem:[#allocation24_spill] sm:$0xff] }
 0x2a2   : > { %788 = vst.msk [vmem:[#allocation4 + $0x20] sm:$0xff] %vm234_vm1, %v771_v56 }
 0x2b2   : > { %v739_v30 = vpop.xlane.xlu1 %738 }
 0x2b3   : > { %v773_v33 = vadd.f32 %v739_v30, %v597_v18  ;;  %v601_v30 = vld [vmem:[#allocation4 + $0x50] sm:$0xff] }
 0x2b5   : > { %790 = vst.msk [vmem:[#allocation4 + $0x30] sm:$0xff] %vm234_vm1, %v773_v33 }
 0x2b6   : > { %v1264_v51 = vpop.xlane.xlu1 %1263 }
 0x2b7   : > { %v1294_v11 = vadd.f32 %v1264_v51, %v1054_v46 }
 0x2b9   : > { %1310 = vst.msk [vmem:[#allocation3 + $0x40] sm:$0xff] %vm234_vm1, %v1294_v11  ;;  %v2939_v11 = vld [vmem:[#allocation16_spill] sm:$0xff] }
 0x2ba   : > { %v1243_v26 = vpop.xlane.xlu1 %1242  ;;  %v2941_v2 = vsub.f32 %v2939_v11, %v2940_v54  ;;  %v2955_v11 = vld [vmem:[#allocation46_spill] sm:$0xff] }
 0x2bb   : > { %v1287_v4 = vadd.f32 %v1243_v26, %v1047_v48  ;;  %v1361_v48 = vld [vmem:[#allocation2 + $0x40] sm:$0xff]  ;;  %vm1351_vm12 = vcmp.lt.s32.totalorder %v2955_v11, 256 }
 0x2bc   : > { %v998_v35 = vmul.f32 1.442695, %v2941_v2 }
 0x2bd   : > { %1303 = vst.msk [vmem:[#allocation3 + $0x8] sm:$0xff] %vm234_vm1, %v1287_v4  ;;  %v1437_v4 = vld [vmem:[#allocation4 + $0x20] sm:$0xff] }
 0x2be   : > { %v1270_v41 = vpop.xlane.xlu1 %1269 }
 0x2bf   : > { %v1296_v52 = vadd.f32 %v1270_v41, %v1056_v1  ;;  %v2942_v1 = vld [vmem:[#allocation43_spill] sm:$0xff] }
 0x2c0   : > { %v1377_v53 = vld [vmem:[#allocation3 + $0x40] sm:$0xff]  ;;  %vm1345_vm8 = vcmp.lt.s32.totalorder %v2942_v1, 256  ;;  %v2959_v1 = vld [vmem:[#allocation34_spill] sm:$0xff] }
 0x2c1   : > { %1312 = vst.msk [vmem:[#allocation3 + $0x50] sm:$0xff] %vm234_vm1, %v1296_v52  ;;  %v2943_v52 = vld [vmem:[#allocation20_spill] sm:$0xff] }
 0x2c2   : > { %v1252_v57 = vpop.xlane.xlu1 %1251 }
 0x2c3   : > { %v1290_v21 = vadd.f32 %v1252_v57, %v1050_v15  ;;  %v2944_v15 = vld [vmem:[#allocation22_spill] sm:$0xff] }
 0x2c4   : > { %v1370_v50 = vld [vmem:[#allocation3 + $0x8] sm:$0xff]  ;;  %v2945_v42 = vsub.f32 %v2943_v52, %v2944_v15 }
 0x2c5   : > { %1739 = vlog2.f32 %v1370_v50  ;;  %1306 = vst.msk [vmem:[#allocation3 + $0x20] sm:$0xff] %vm234_vm1, %v1290_v21  ;;  %v1363_v21 = vld [vmem:[#allocation2 + $0x50] sm:$0xff] }
 0x2c6   : > { %v1276_v24 = vpop.xlane.xlu1 %1275  ;;  %1741 = vlog2.f32 %v1377_v53  ;;  %v1016_v57 = vmul.f32 1.442695, %v2945_v42 }
 0x2c7   : > { %v1298_v25 = vadd.f32 %v1276_v24, %v1058_v17 }
 0x2c8   : > { %v1379_v28 = vld [vmem:[#allocation3 + $0x50] sm:$0xff] }
 0x2c9   : > { %1314 = vst.msk [vmem:[#allocation3 + $0x60] sm:$0xff] %vm234_vm1, %v1298_v25 }
 0x2ca   : > { %v1258_v62 = vpop.xlane.xlu1 %1257 }
 0x2cb   : > { %v1292_v56 = vadd.f32 %v1258_v62, %v1052_v38  ;;  %v2946_v38 = vld [vmem:[#allocation44_spill] sm:$0xff] }
 0x2cc   : > { %v1373_v39 = vld [vmem:[#allocation3 + $0x20] sm:$0xff]  ;;  %vm1347_vm9 = vcmp.lt.s32.totalorder %v2946_v38, 256 }
 0x2cd   : > { %1743 = vlog2.f32 %v1373_v39  ;;  %1308 = vst.msk [vmem:[#allocation3 + $0x30] sm:$0xff] %vm234_vm1, %v1292_v56 }
 0x2ce   : > { %1745 = vlog2.f32 %v1379_v28  ;;  %v1282_v22 = vpop.xlane.xlu1 %1281  ;;  %v2948_v28 = vld [vmem:[#allocation26_spill] sm:$0xff] }
 0x2cf   : > { %v1740_v16 = vpop.eup %1739  ;;  %v1300_v63 = vadd.f32 %v1282_v22, %v1060_v0  ;;  %v2949_v56 = vsub.f32 %v2947_v31, %v2948_v28  ;;  %v1359_v0 = vld [vmem:[#allocation2 + $0x30] sm:$0xff] }
 0x2d0   : > { %v1388_v59 = vmul.f32 0.6931472, %v1740_v16  ;;  %v1381_v5 = vld [vmem:[#allocation3 + $0x60] sm:$0xff]  ;;  %v1742_v19 = vpop.eup %1741 }
 0x2d1   : > { %1316 = vst.msk [vmem:[#allocation3 + $0x70] sm:$0xff] %vm234_vm1, %v1300_v63  ;;  %1747 = vlog2.f32 %v1381_v5  ;;  %v1402_v44 = vmul.f32 0.6931472, %v1742_v19  ;;  %v1002_v39 = vmul.f32 1.442695, %v2949_v56  ;;  %v1365_v16 = vld [vmem:[#allocation2 + $0x60] sm:$0xff] }
 0x2d2   : > { %v1418_v61 = vadd.f32 %v1388_v59, %v1354_v23  ;;  %v745_v12 = vpop.xlane.xlu1 %744  ;;  %v2950_v5 = vld [vmem:[#allocation42_spill] sm:$0xff]  ;;  %v2952_v19 = vld [vmem:[#allocation28_spill] sm:$0xff] }
 0x2d3   : > { %v775_v14 = vadd.f32 %v745_v12, %v599_v60  ;;  %v1425_v13 = vadd.f32 %v1402_v44, %v1361_v48  ;;  %vm1343_vm10 = vcmp.lt.s32.totalorder %v2950_v5, 256  ;;  %v1439_v60 = vld [vmem:[#allocation4 + $0x30] sm:$0xff]  ;;  %v2951_v12 = vld [vmem:[#allocation45_spill] sm:$0xff]  ;;  %v2969_v5 = vld [vmem:[#allocation50_spill] sm:$0xff] }
 0x2d4   : > { %v1450_v18 = vsub.f32 %v1418_v61, %v1434_v6  ;;  %v1375_v36 = vld [vmem:[#allocation3 + $0x30] sm:$0xff]  ;;  %vm1349_vm11 = vcmp.lt.s32.totalorder %v2951_v12, 256 }
 0x2d5   : > { %1749 = vlog2.f32 %v1375_v36  ;;  %792 = vst.msk [vmem:[#allocation4 + $0x40] sm:$0xff] %vm234_vm1, %v775_v14 }
 0x2d6   : > { %v1466_v43 = vsel %vm1338_vm6, %v1450_v18, inf  ;;  %v751_v33 = vpop.xlane.xlu1 %750  ;;  %v2953_v18 = vld [vmem:[#allocation29_spill] sm:$0xff] }
 0x2d7   : > { %v1744_v40 = vpop.eup %1743  ;;  %1482 = vst.msk [vmem:[%s2710_s19 + $0x8] sm:$0xff] %vm234_vm1, %v1466_v43  ;;  %v777_v29 = vadd.f32 %v751_v33, %v601_v30  ;;  %v2954_v36 = vsub.f32 %v2952_v19, %v2953_v18  ;;  %v1367_v43 = vld [vmem:[#allocation2 + $0x70] sm:$0xff] }
 0x2d8   : > { %v1746_v46 = vpop.eup %1745  ;;  %v1394_v37 = vmul.f32 0.6931472, %v1744_v40  ;;  %v1383_v51 = vld [vmem:[#allocation3 + $0x70] sm:$0xff]  ;;  %v598_v40 = vld [vmem:[#allocation4 + $0x38] sm:$0xff] }
 0x2d9   : > { %1751 = vlog2.f32 %v1383_v51  ;;  %794 = vst.msk [vmem:[#allocation4 + $0x50] sm:$0xff] %vm234_vm1, %v777_v29  ;;  %v1406_v10 = vmul.f32 0.6931472, %v1746_v46  ;;  %v1004_v30 = vmul.f32 1.442695, %v2954_v36 }
 0x2da   : > { %v1421_v9 = vadd.f32 %v1394_v37, %v1357_v7  ;;  %v757_v26 = vpop.xlane.xlu1 %756  ;;  %1753 = vpow2.f32 %v998_v35  ;;  %v2956_v35 = vld [vmem:[#allocation30_spill] sm:$0xff]  ;;  %v2957_v7 = vld [vmem:[#allocation31_spill] sm:$0xff] }
 0x2db   : > { %v779_v32 = vadd.f32 %v757_v26, %v603_v55  ;;  %v1748_v58 = vpop.eup %1747  ;;  %v1427_v45 = vadd.f32 %v1406_v10, %v1363_v21  ;;  %1755 = vpow2.f32 %v1016_v57  ;;  %v1030_v55 = vld [vmem:[#allocation3] sm:$0xff]  ;;  %v2958_v48 = vsub.f32 %v2956_v35, %v2957_v7  ;;  %v1032_v57 = vld [vmem:[#allocation3 + $0x10] sm:$0xff]  ;;  %v2962_v21 = vld [vmem:[#allocation36_spill] sm:$0xff] }
 0x2dc   : > { %v1453_v49 = vsub.f32 %v1421_v9, %v1437_v4  ;;  %v1441_v41 = vld [vmem:[#allocation4 + $0x40] sm:$0xff]  ;;  %v1410_v53 = vmul.f32 0.6931472, %v1748_v58  ;;  %1757 = vpow2.f32 %v1002_v39 }
 0x2dd   : > { %v1457_v47 = vsub.f32 %v1425_v13, %v1441_v41  ;;  %796 = vst.msk [vmem:[#allocation4 + $0x60] sm:$0xff] %vm234_vm1, %v779_v32  ;;  %1759 = vpow2.f32 %v1004_v30  ;;  %v1020_v9 = vmul.f32 1.442695, %v2958_v48  ;;  %v1039_v32 = vld [vmem:[#allocation3 + $0x48] sm:$0xff]  ;;  %v1433_v35 = vld [vmem:[#allocation4] sm:$0xff] }
 0x2de   : > { %v1469_v50 = vsel %vm1341_vm7, %v1453_v49, inf  ;;  %v763_v17 = vpop.xlane.xlu1 %762  ;;  %v1429_v61 = vadd.f32 %v1410_v53, %v1365_v16  ;;  %v2960_v49 = vld [vmem:[#allocation35_spill] sm:$0xff]  ;;  %v1041_v16 = vld [vmem:[#allocation3 + $0x58] sm:$0xff] }
 0x2df   : > { %v1750_v3 = vpop.eup %1749  ;;  %1485 = vst.msk [vmem:[%s2710_s19 + $0x20] sm:$0xff] %vm234_vm1, %v1469_v50  ;;  %v1473_v24 = vsel %vm1345_vm8, %v1457_v47, inf  ;;  %v781_v25 = vadd.f32 %v763_v17, %v605_v20  ;;  %1761 = vpow2.f32 %v1020_v9  ;;  %v2961_v41 = vsub.f32 %v2959_v1, %v2960_v49  ;;  %v2963_v50 = vld [vmem:[#allocation38_spill] sm:$0xff] }
 0x2e0   : > { %v1398_v27 = vmul.f32 0.6931472, %v1750_v3  ;;  %1489 = vst.msk [vmem:[%s2710_s19 + $0x40] sm:$0xff] %vm234_vm1, %v1473_v24  ;;  %v1443_v62 = vld [vmem:[#allocation4 + $0x50] sm:$0xff]  ;;  %v2964_v17 = vsub.f32 %v2962_v21, %v2963_v50 }
 0x2e1   : > { %v1459_v22 = vsub.f32 %v1427_v45, %v1443_v62  ;;  %798 = vst.msk [vmem:[#allocation4 + $0x70] sm:$0xff] %vm234_vm1, %v781_v25  ;;  %v1008_v20 = vmul.f32 1.442695, %v2961_v41  ;;  %v1033_v25 = vld [vmem:[#allocation3 + $0x18] sm:$0xff]  ;;  %v1435_v21 = vld [vmem:[#allocation4 + $0x10] sm:$0xff] }
 0x2e2   : > { %v1423_v63 = vadd.f32 %v1398_v27, %v1359_v0  ;;  %v1024_v3 = vmul.f32 1.442695, %v2964_v17  ;;  %v2965_v27 = vld [vmem:[#allocation47_spill] sm:$0xff]  ;;  %v2966_v62 = vld [vmem:[#allocation48_spill] sm:$0xff] }
 0x2e3   : > { %v1752_v59 = vpop.eup %1751  ;;  %v1475_v23 = vsel %vm1347_vm9, %v1459_v22, inf  ;;  %1763 = vpow2.f32 %v1008_v20  ;;  %v2967_v31 = vsub.f32 %v2965_v27, %v2966_v62  ;;  %v1355_v20 = vld [vmem:[#allocation2 + $0x10] sm:$0xff]  ;;  %v1793_v62 = vld [vmem:[%s1910_s16 + $0x18] sm:$0xff] }
 0x2e4   : > { %v1455_v34 = vsub.f32 %v1423_v63, %v1439_v60  ;;  %1491 = vst.msk [vmem:[%s2710_s19 + $0x50] sm:$0xff] %vm234_vm1, %v1475_v23  ;;  %v1445_v6 = vld [vmem:[#allocation4 + $0x60] sm:$0xff]  ;;  %v1414_v14 = vmul.f32 0.6931472, %v1752_v59  ;;  %v1754_v46 = vpop.eup %1753  ;;  %1765 = vpow2.f32 %v1024_v3  ;;  %vm1340_vm15 = vcmp.lt.s32.totalorder %v1793_v62, 256 }
 0x2e5   : > { %v1461_v33 = vsub.f32 %v1429_v61, %v1445_v6  ;;  %v1046_v8 = vmul.f32 %v1754_v46, %v1030_v55  ;;  %v1756_v4 = vpop.eup %1755  ;;  %v1012_v28 = vmul.f32 1.442695, %v2967_v31  ;;  %v2968_v59 = vld [vmem:[#allocation49_spill] sm:$0xff]  ;;  %v1035_v6 = vld [vmem:[#allocation3 + $0x28] sm:$0xff]  ;;  %v1436_v31 = vld [vmem:[#allocation4 + $0x18] sm:$0xff] }
 0x2e6   : > { %v1471_v44 = vsel %vm1343_vm10, %v1455_v34, inf  ;;  %v1431_v29 = vadd.f32 %v1414_v14, %v1367_v43  ;;  %v1055_v52 = vmul.f32 %v1756_v4, %v1039_v32  ;;  %v1758_v15 = vpop.eup %1757  ;;  %v2970_v60 = vsub.f32 %v2968_v59, %v2969_v5  ;;  %v1043_v43 = vld [vmem:[#allocation3 + $0x68] sm:$0xff]  ;;  %v1353_v46 = vld [vmem:[#allocation2] sm:$0xff] }
 0x2e7   : > { %1487 = vst.msk [vmem:[%s2710_s19 + $0x30] sm:$0xff] %vm234_vm1, %v1471_v44  ;;  %v1477_v37 = vsel %vm1349_vm11, %v1461_v33, inf  ;;  %v742_v51 = vpop.xlane.xlu0 %741  ;;  %v1048_v24 = vmul.f32 %v1758_v15, %v1032_v57  ;;  %v1760_v45 = vpop.eup %1759 }
 0x2e8   : > { %1493 = vst.msk [vmem:[%s2710_s19 + $0x60] sm:$0xff] %vm234_vm1, %v1477_v37  ;;  %v1447_v54 = vld [vmem:[#allocation4 + $0x70] sm:$0xff]  ;;  %v774_v2 = vadd.f32 %v742_v51, %v598_v40  ;;  %v1049_v39 = vmul.f32 %v1760_v45, %v1033_v25  ;;  %v1028_v23 = vmul.f32 1.442695, %v2970_v60  ;;  %v600_v45 = vld [vmem:[#allocation4 + $0x48] sm:$0xff] }
 0x2e9   : > { %v1463_v26 = vsub.f32 %v1431_v29, %v1447_v54  ;;  %v1762_v0 = vpop.eup %1761  ;;  %v1037_v54 = vld [vmem:[#allocation3 + $0x38] sm:$0xff] }
 0x2ea   : > { %791 = vst.msk [vmem:[#allocation4 + $0x38] sm:$0xff] %vm234_vm1, %v774_v2  ;;  %v1057_v61 = vmul.f32 %v1762_v0, %v1041_v16  ;;  %v1791_v2 = vld [vmem:[%s1910_s16] sm:$0xff] }
 0x2eb   : > { %v1479_v13 = vsel %vm1351_vm12, %v1463_v26, inf  ;;  %v1240_v10 = vpop.xlane.xlu0 %1239  ;;  %vm1337_vm13 = vcmp.lt.s32.totalorder %v1791_v2, 256 }
 0x2ec   : > { %1495 = vst.msk [vmem:[%s2710_s19 + $0x70] sm:$0xff] %vm234_vm1, %v1479_v13  ;;  %v1286_v58 = vadd.f32 %v1240_v10, %v1046_v8  ;;  %v1045_v10 = vld [vmem:[#allocation3 + $0x78] sm:$0xff] }
 0x2ed   : > { %v1764_v12 = vpop.eup %1763 }
 0x2ee   : > { %1302 = vst.msk [vmem:[#allocation3] sm:$0xff] %vm234_vm1, %v1286_v58  ;;  %v1051_v18 = vmul.f32 %v1764_v12, %v1035_v6  ;;  %v1766_v36 = vpop.eup %1765  ;;  %v1358_v6 = vld [vmem:[#allocation2 + $0x28] sm:$0xff] }
 0x2ef   : > { %v1267_v42 = vpop.xlane.xlu0 %1266  ;;  %v1059_v37 = vmul.f32 %v1766_v36, %v1043_v43  ;;  %v1794_v36 = vld [vmem:[%s1910_s16 + $0x28] sm:$0xff] }
 0x2f0   : > { %v1295_v47 = vadd.f32 %v1267_v42, %v1055_v52  ;;  %vm1342_vm0 = vcmp.lt.s32.totalorder %v1794_v36, 256 }
 0x2f2   : > { %1311 = vst.msk [vmem:[#allocation3 + $0x48] sm:$0xff] %vm234_vm1, %v1295_v47  ;;  %v1792_v47 = vld [vmem:[%s1910_s16 + $0x10] sm:$0xff] }
 0x2f3   : > { %v1246_v53 = vpop.xlane.xlu0 %1245  ;;  %vm1339_vm14 = vcmp.lt.s32.totalorder %v1792_v47, 256 }
 0x2f4   : > { %v1288_v38 = vadd.f32 %v1246_v53, %v1048_v24  ;;  %v1356_v53 = vld [vmem:[#allocation2 + $0x18] sm:$0xff] }
 0x2f5   : > { %v1369_v56 = vld [vmem:[#allocation3] sm:$0xff] }
 0x2f6   : > { %1767 = vlog2.f32 %v1369_v56  ;;  %1304 = vst.msk [vmem:[#allocation3 + $0x10] sm:$0xff] %vm234_vm1, %v1288_v38 }
 0x2f7   : > { %v1249_v22 = vpop.xlane.xlu0 %1248  ;;  %1769 = vpow2.f32 %v1012_v28 }
 0x2f8   : > { %v1289_v63 = vadd.f32 %v1249_v22, %v1049_v39  ;;  %1771 = vpow2.f32 %v1028_v23  ;;  %v602_v22 = vld [vmem:[#allocation4 + $0x58] sm:$0xff] }
 0x2f9   : > { %v1378_v7 = vld [vmem:[#allocation3 + $0x48] sm:$0xff] }
 0x2fa   : > { %1305 = vst.msk [vmem:[#allocation3 + $0x18] sm:$0xff] %vm234_vm1, %v1289_v63 }
 0x2fb   : > { %v1273_v34 = vpop.xlane.xlu0 %1272 }
 0x2fc   : > { %v1297_v14 = vadd.f32 %v1273_v34, %v1057_v61  ;;  %v604_v34 = vld [vmem:[#allocation4 + $0x68] sm:$0xff] }
 0x2fd   : > { %v1371_v19 = vld [vmem:[#allocation3 + $0x10] sm:$0xff] }
 0x2fe   : > { %1773 = vlog2.f32 %v1371_v19  ;;  %1313 = vst.msk [vmem:[#allocation3 + $0x58] sm:$0xff] %vm234_vm1, %v1297_v14  ;;  %v1362_v14 = vld [vmem:[#allocation2 + $0x48] sm:$0xff] }
 0x2ff   : > { %v1255_v30 = vpop.xlane.xlu0 %1254 }
 0x300   : > { %v1768_v33 = vpop.eup %1767  ;;  %v1291_v40 = vadd.f32 %v1255_v30, %v1051_v18  ;;  %v1438_v30 = vld [vmem:[#allocation4 + $0x28] sm:$0xff] }
 0x301   : > { %v1386_v44 = vmul.f32 0.6931472, %v1768_v33  ;;  %v1372_v29 = vld [vmem:[#allocation3 + $0x18] sm:$0xff]  ;;  %v1770_v51 = vpop.eup %1769 }
 0x302   : > { %1775 = vlog2.f32 %v1372_v29  ;;  %1307 = vst.msk [vmem:[#allocation3 + $0x28] sm:$0xff] %vm234_vm1, %v1291_v40  ;;  %v1053_v26 = vmul.f32 %v1770_v51, %v1037_v54  ;;  %v1772_v8 = vpop.eup %1771  ;;  %v1795_v29 = vld [vmem:[%s1910_s16 + $0x48] sm:$0xff]  ;;  %v606_v51 = vld [vmem:[#allocation4 + $0x78] sm:$0xff] }
 0x303   : > { %v1417_v55 = vadd.f32 %v1386_v44, %v1353_v46  ;;  %v1279_v11 = vpop.xlane.xlu0 %1278  ;;  %1777 = vlog2.f32 %v1378_v7  ;;  %v1061_v52 = vmul.f32 %v1772_v8, %v1045_v10  ;;  %vm1346_vm2 = vcmp.lt.s32.totalorder %v1795_v29, 256  ;;  %v1796_v8 = vld [vmem:[%s1910_s16 + $0x58] sm:$0xff] }
 0x304   : > { %v1299_v48 = vadd.f32 %v1279_v11, %v1059_v37  ;;  %v1364_v11 = vld [vmem:[#allocation2 + $0x58] sm:$0xff]  ;;  %vm1348_vm3 = vcmp.lt.s32.totalorder %v1796_v8, 256 }
 0x305   : > { %v1449_v9 = vsub.f32 %v1417_v55, %v1433_v35  ;;  %v1380_v58 = vld [vmem:[#allocation3 + $0x58] sm:$0xff] }
 0x306   : > { %1315 = vst.msk [vmem:[#allocation3 + $0x68] sm:$0xff] %vm234_vm1, %v1299_v48  ;;  %v1360_v10 = vld [vmem:[#allocation2 + $0x38] sm:$0xff] }
 0x307   : > { %v1465_v4 = vsel %vm1337_vm13, %v1449_v9, inf  ;;  %v1261_v13 = vpop.xlane.xlu0 %1260 }
 0x308   : > { %v1774_v32 = vpop.eup %1773  ;;  %1481 = vst.msk [vmem:[%s2710_s19] sm:$0xff] %vm234_vm1, %v1465_v4  ;;  %v1293_v1 = vadd.f32 %v1261_v13, %v1053_v26 }
 0x309   : > { %v1390_v49 = vmul.f32 0.6931472, %v1774_v32  ;;  %v1374_v41 = vld [vmem:[#allocation3 + $0x28] sm:$0xff] }
 0x30a   : > { %1779 = vlog2.f32 %v1374_v41  ;;  %1309 = vst.msk [vmem:[#allocation3 + $0x38] sm:$0xff] %vm234_vm1, %v1293_v1  ;;  %v1797_v41 = vld [vmem:[%s1910_s16 + $0x38] sm:$0xff] }
 0x30b   : > { %v1419_v15 = vadd.f32 %v1390_v49, %v1355_v20  ;;  %1781 = vlog2.f32 %v1380_v58  ;;  %v1285_v42 = vpop.xlane.xlu0 %1284  ;;  %v1366_v58 = vld [vmem:[#allocation2 + $0x68] sm:$0xff]  ;;  %vm1344_vm4 = vcmp.lt.s32.totalorder %v1797_v41, 256  ;;  %v1440_v20 = vld [vmem:[#allocation4 + $0x38] sm:$0xff] }
 0x30c   : > { %v1776_v57 = vpop.eup %1775  ;;  %v1301_v50 = vadd.f32 %v1285_v42, %v1061_v52  ;;  %v1798_v42 = vld [vmem:[%s1910_s16 + $0x68] sm:$0xff] }
 0x30d   : > { %v1451_v17 = vsub.f32 %v1419_v15, %v1435_v21  ;;  %v1392_v3 = vmul.f32 0.6931472, %v1776_v57  ;;  %v1382_v24 = vld [vmem:[#allocation3 + $0x68] sm:$0xff]  ;;  %v1778_v56 = vpop.eup %1777  ;;  %vm1350_vm5 = vcmp.lt.s32.totalorder %v1798_v42, 256 }
 0x30e   : > { %1317 = vst.msk [vmem:[#allocation3 + $0x78] sm:$0xff] %vm234_vm1, %v1301_v50  ;;  %1783 = vlog2.f32 %v1382_v24  ;;  %v1404_v5 = vmul.f32 0.6931472, %v1778_v56  ;;  %v1368_v50 = vld [vmem:[#allocation2 + $0x78] sm:$0xff] }
 0x30f   : > { %v1467_v25 = vsel %vm1339_vm14, %v1451_v17, inf  ;;  %v1420_v38 = vadd.f32 %v1392_v3, %v1356_v53  ;;  %v748_v27 = vpop.xlane.xlu0 %747  ;;  %v1799_v53 = vld [vmem:[%s1910_s16 + $0x78] sm:$0xff] }
 0x310   : > { %1483 = vst.msk [vmem:[%s2710_s19 + $0x10] sm:$0xff] %vm234_vm1, %v1467_v25  ;;  %v776_v28 = vadd.f32 %v748_v27, %v600_v45  ;;  %v1426_v43 = vadd.f32 %v1404_v5, %v1362_v14  ;;  %vm1352_vm6 = vcmp.lt.s32.totalorder %v1799_v53, 256 }
 0x311   : > { %v1452_v39 = vsub.f32 %v1420_v38, %v1436_v31  ;;  %v1376_v0 = vld [vmem:[#allocation3 + $0x38] sm:$0xff] }
 0x312   : > { %1785 = vlog2.f32 %v1376_v0  ;;  %793 = vst.msk [vmem:[#allocation4 + $0x48] sm:$0xff] %vm234_vm1, %v776_v28 }
 0x313   : > { %v1468_v16 = vsel %vm1340_vm15, %v1452_v39, inf  ;;  %v754_v63 = vpop.xlane.xlu0 %753 }
 0x314   : > { %v1780_v59 = vpop.eup %1779  ;;  %1484 = vst.msk [vmem:[%s2710_s19 + $0x18] sm:$0xff] %vm234_vm1, %v1468_v16  ;;  %v778_v60 = vadd.f32 %v754_v63, %v602_v22 }
 0x315   : > { %v1782_v23 = vpop.eup %1781  ;;  %v1396_v61 = vmul.f32 0.6931472, %v1780_v59  ;;  %v1384_v12 = vld [vmem:[#allocation3 + $0x78] sm:$0xff] }
 0x316   : > { %1787 = vlog2.f32 %v1384_v12  ;;  %795 = vst.msk [vmem:[#allocation4 + $0x58] sm:$0xff] %vm234_vm1, %v778_v60  ;;  %v1408_v33 = vmul.f32 0.6931472, %v1782_v23 }
 0x317   : > { %v1422_v19 = vadd.f32 %v1396_v61, %v1358_v6  ;;  %v760_v18 = vpop.xlane.xlu0 %759 }
 0x318   : > { %v780_v40 = vadd.f32 %v760_v18, %v604_v34  ;;  %v1784_v44 = vpop.eup %1783  ;;  %v1428_v48 = vadd.f32 %v1408_v33, %v1364_v11 }
 0x319   : > { %v1454_v46 = vsub.f32 %v1422_v19, %v1438_v30  ;;  %v1442_v37 = vld [vmem:[#allocation4 + $0x48] sm:$0xff]  ;;  %v1412_v9 = vmul.f32 0.6931472, %v1784_v44 }
 0x31a   : > { %v1458_v55 = vsub.f32 %v1426_v43, %v1442_v37  ;;  %797 = vst.msk [vmem:[#allocation4 + $0x68] sm:$0xff] %vm234_vm1, %v780_v40 }
 0x31b   : > { %v1470_v54 = vsel %vm1342_vm0, %v1454_v46, inf  ;;  %v766_v2 = vpop.xlane.xlu0 %765  ;;  %v1430_v15 = vadd.f32 %v1412_v9, %v1366_v58 }
 0x31c   : > { %v1786_v35 = vpop.eup %1785  ;;  %1486 = vst.msk [vmem:[%s2710_s19 + $0x28] sm:$0xff] %vm234_vm1, %v1470_v54  ;;  %v1474_v7 = vsel %vm1346_vm2, %v1458_v55, inf  ;;  %v782_v26 = vadd.f32 %v766_v2, %v606_v51 }
 0x31d   : > { %v1400_v4 = vmul.f32 0.6931472, %v1786_v35  ;;  %1490 = vst.msk [vmem:[%s2710_s19 + $0x48] sm:$0xff] %vm234_vm1, %v1474_v7  ;;  %v1444_v13 = vld [vmem:[#allocation4 + $0x58] sm:$0xff] }
 0x31e   : > { %v1460_v32 = vsub.f32 %v1428_v48, %v1444_v13  ;;  %799 = vst.msk [vmem:[#allocation4 + $0x78] sm:$0xff] %vm234_vm1, %v782_v26 }
 0x31f   : > { %v1424_v1 = vadd.f32 %v1400_v4, %v1360_v10 }
 0x320   : > { %v1788_v49 = vpop.eup %1787  ;;  %v1476_v52 = vsel %vm1348_vm3, %v1460_v32, inf }
 0x321   : > { %v1456_v57 = vsub.f32 %v1424_v1, %v1440_v20  ;;  %1492 = vst.msk [vmem:[%s2710_s19 + $0x58] sm:$0xff] %vm234_vm1, %v1476_v52  ;;  %v1446_v47 = vld [vmem:[#allocation4 + $0x68] sm:$0xff]  ;;  %v1416_v21 = vmul.f32 0.6931472, %v1788_v49 }
 0x322   : > { %v1462_v17 = vsub.f32 %v1430_v15, %v1446_v47 }
 0x323   : > { %v1472_v3 = vsel %vm1344_vm4, %v1456_v57, inf  ;;  %v1432_v24 = vadd.f32 %v1416_v21, %v1368_v50 }
 0x324   : > { %1488 = vst.msk [vmem:[%s2710_s19 + $0x38] sm:$0xff] %vm234_vm1, %v1472_v3  ;;  %v1478_v45 = vsel %vm1350_vm5, %v1462_v17, inf }
 0x325   : > { %1494 = vst.msk [vmem:[%s2710_s19 + $0x68] sm:$0xff] %vm234_vm1, %v1478_v45  ;;  %v1448_v25 = vld [vmem:[#allocation4 + $0x78] sm:$0xff] }
 0x326   : > { %v1464_v38 = vsub.f32 %v1432_v24, %v1448_v25 }
 0x328   : > { %v1480_v27 = vsel %vm1352_vm6, %v1464_v38, inf }
 0x329   : > { %1496 = vst.msk [vmem:[%s2710_s19 + $0x78] sm:$0xff] %vm234_vm1, %v1480_v27 }
 0x32a PF: > { %s13_s14 = sadd.s32 1, %s1822_s14   ;;  %s2971_s12 = smov %s1818_s13 }
 0x32b   : > { %p10_p5 = scmp.ge.s32.totalorder %s13_s14, 4   ;;  %s2972_s13 = smov %s2974_s15 }
 0x32d   :  { %12 = sbr.rel (!%p10_p5) target bundleno = 2 (0x2), region = 76 }

</bundles_post_ra>
